<compile_context>
chip_gen: v5e
topology: v5e:2x2
jax: 0.10.0
libtpu: 0.0.40
codegen_flags: <defaults>
</compile_context>

<pallas_src>
import functools
import math

import jax
import jax.numpy as jnp
from jax.experimental import pallas as pl
from jax.experimental.pallas import tpu as pltpu


# ---------------- configuration (mirrors FC.__init__) ----------------
HS = (16, 32, 32, 8)          # hs tuple
VARIANCE_IN = 1.0
VARIANCE_OUT = 1.0
OUT_ACT = False
ACT = jnp.tanh                # `act` argument (None -> identity)


def _identity(x):
    return x


def _normalize2mom_const(act, key):
    """e3nn's normalize2mom: scale act so E[act(z)^2] = 1 for z ~ N(0,1)."""
    z = jax.random.normal(key, (1_000_000,), dtype=jnp.float32)
    return float(jnp.mean(act(z) ** 2) ** -0.5)


def _round_up(x, m):
    return (x + m - 1) // m * m


# ---------------- Pallas kernel ----------------
def fc_kernel(x_ref, *refs, act, act_cst, variance_out, out_act):
    """One row-tile of the whole MLP chain (matmul -> act -> ... -> matmul).

    All refs are in the folded layout: x_ref (R, F*h0); w_refs[i] are the
    block-diagonal expanded weights (F*hs[i], F*hs[i+1]) with the per-forward
    scaling already folded in host-side; o_ref (R, F*hs[-1])."""
    w_refs = refs[:-1]
    o_ref = refs[-1]
    n_layers = len(w_refs)

    h = x_ref[...]
    for i, w_ref in enumerate(w_refs):
        w = w_ref[...]
        # MXU matmul, f32 accumulation regardless of transfer dtype.
        h = jnp.dot(h.astype(w.dtype), w, preferred_element_type=jnp.float32)
        last = i == n_layers - 1
        if (not last) or out_act:
            # normalize2mom(act); activation math kept in f32 (v5e-friendly).
            h = act(h) * act_cst
        if last and out_act:
            h = h * variance_out ** 0.5
    o_ref[...] = h.astype(o_ref.dtype)


# ---------------- wrapper ----------------
def fc_forward(x, weights, *, hs=HS, act=ACT, act_cst=1.0,
               variance_in=VARIANCE_IN, variance_out=VARIANCE_OUT,
               out_act=OUT_ACT, tile_n=2048, compute_dtype=None):
    """Pallas forward of FC.  x: [N, hs[0]]; weights[i]: [hs[i], hs[i+1]]."""
    if act is None:
        act, act_cst = _identity, 1.0
    N, h0 = x.shape
    assert h0 == hs[0] and len(weights) == len(hs) - 1
    n_layers = len(weights)
    out_dtype = x.dtype
    if compute_dtype is None:
        compute_dtype = x.dtype
    itemsize = jnp.dtype(compute_dtype).itemsize

    # --- fold factor F: make every folded width F*h a multiple of 128 lanes --
    F = 1
    for h in hs:
        F = math.lcm(F, 128 // math.gcd(128, h))
    # keep the block-diagonal weights small (they scale as F^2)
    while F > 1 and sum(F * a * F * b for a, b in zip(hs, hs[1:])) * itemsize > 8 * 2**20:
        F //= 2

    # --- pre-scale weights once host-side, expand to block-diagonal form -----
    eye = jnp.eye(F, dtype=jnp.float32)
    ws = []
    for i, W in enumerate(weights):
        W = W.astype(jnp.float32)
        scale = (hs[0] * variance_in) ** -0.5 if i == 0 else hs[i] ** -0.5
        if i == n_layers - 1 and not out_act:
            scale = scale * variance_out ** 0.5
        W = W * scale
        ws.append(jnp.kron(eye, W).astype(compute_dtype))   # blockdiag(F copies)

    # --- choose row tile: big (amortize ~0.35us/step), aligned, padded N -----
    # folded sublane dim must stay a multiple of the native sublane tiling
    # (8 for 32-bit, 16 for 16-bit dtypes).
    min_item = min(itemsize, jnp.dtype(out_dtype).itemsize)
    sublane = 8 * max(1, 4 // min_item)
    row_align = F * sublane
    tile_n = max(row_align,
                 min(tile_n, _round_up(N, row_align)) // row_align * row_align)

    # VMEM guard: double-buffered x/out tiles + weights + f32 intermediates,
    # kept well under v5e's 16 MiB scoped default (also fine on v7x's 64 MiB).
    def _vmem_est(t):
        r = t // F
        tiles = 2 * r * F * (hs[0] + hs[-1]) * itemsize
        interm = 3 * r * F * max(hs) * 4
        wbytes = 2 * sum(w.size for w in ws) * itemsize
        return tiles + interm + wbytes
    while tile_n > row_align and _vmem_est(tile_n) > 12 * 2**20:
        tile_n -= row_align

    N_pad = _round_up(N, tile_n)
    xp = x.astype(compute_dtype)
    if N_pad != N:
        xp = jnp.pad(xp, ((0, N_pad - N), (0, 0)))
    x_folded = xp.reshape(N_pad // F, F * h0)        # free row-major refold

    R = tile_n // F
    grid = (N_pad // tile_n,)

    in_specs = [pl.BlockSpec((R, F * hs[0]), lambda i: (i, 0))]
    for h1, h2 in zip(hs, hs[1:]):
        # whole folded weight resident in VMEM; constant block index -> one DMA.
        in_specs.append(pl.BlockSpec((F * h1, F * h2), lambda i: (0, 0)))
    out_specs = pl.BlockSpec((R, F * hs[-1]), lambda i: (i, 0))

    kernel = functools.partial(fc_kernel, act=act, act_cst=act_cst,
                               variance_out=variance_out, out_act=out_act)

    out_folded = pl.pallas_call(
        kernel,
        out_shape=jax.ShapeDtypeStruct((N_pad // F, F * hs[-1]), out_dtype),
        grid_spec=pltpu.PrefetchScalarGridSpec(
            num_scalar_prefetch=0,
            grid=grid,
            in_specs=in_specs,
            out_specs=out_specs,
        ),
        compiler_params=pltpu.CompilerParams(
            dimension_semantics=("parallel",)),
    )(x_folded, *ws)

    return out_folded.reshape(N_pad, hs[-1])[:N]


# ---------------- pure-JAX reference ----------------
def fc_reference(x, weights, *, hs=HS, act=ACT, act_cst=1.0,
                 variance_in=VARIANCE_IN, variance_out=VARIANCE_OUT,
                 out_act=OUT_ACT, compute_dtype=None):
    if act is None:
        act, act_cst = _identity, 1.0
    if compute_dtype is None:
        compute_dtype = x.dtype
    n = len(weights)
    h = x.astype(compute_dtype)
    for i, W in enumerate(weights):
        W = W.astype(jnp.float32)
        if i == 0:
            W = W / (hs[0] * variance_in) ** 0.5
        if i > 0:
            W = W / hs[i] ** 0.5
        if i == n - 1 and not out_act:
            W = W * variance_out ** 0.5
        h = jnp.dot(h.astype(compute_dtype), W.astype(compute_dtype),
                    preferred_element_type=jnp.float32)
        if i < n - 1:
            h = act(h) * act_cst
        if i == n - 1 and out_act:
            h = act(h) * act_cst
            h = h * variance_out ** 0.5
    return h.astype(x.dtype)


if __name__ == "__main__":
    key = jax.random.PRNGKey(0)
    k_x, k_cst, *k_ws = jax.random.split(key, 2 + len(HS) - 1)

    # deterministic parameter init: torch.randn(h1, h2) analogue
    weights = [jax.random.normal(kw, (h1, h2), dtype=jnp.float32)
               for kw, (h1, h2) in zip(k_ws, zip(HS, HS[1:]))]
    # normalize2mom constant for tanh (Monte-Carlo, like e3nn)
    act_cst = _normalize2mom_const(ACT, k_cst)

    # f32 path: ragged N (exercises padding) with a small tile (multi-step grid).
    N = 300
    x = jax.random.normal(k_x, (N, HS[0]), dtype=jnp.float32)
    out = jax.block_until_ready(
        fc_forward(x, weights, hs=HS, act=ACT, act_cst=act_cst, tile_n=128))
    ref = fc_reference(x, weights, hs=HS, act=ACT, act_cst=act_cst)
    assert out.shape == (N, HS[-1]) and out.dtype == x.dtype
    assert jnp.allclose(out, ref, atol=1e-3, rtol=1e-3)

    # bf16 transfer path (halves HBM traffic for x); f32 accumulation inside.
    xb = x.astype(jnp.bfloat16)
    outb = jax.block_until_ready(
        fc_forward(xb, weights, hs=HS, act=ACT, act_cst=act_cst))
    refb = fc_reference(xb, weights, hs=HS, act=ACT, act_cst=act_cst)
    assert outb.shape == (N, HS[-1]) and outb.dtype == jnp.bfloat16
    assert jnp.allclose(outb.astype(jnp.float32), refb.astype(jnp.float32),
                        atol=2e-2, rtol=2e-2)

    print("KERNEL_OK")
</pallas_src>

<mosaic_0001>
module attributes {stable_mosaic.version = 11 : i64} {
  func.func @fc_kernel(%arg0: i32, %arg1: memref<8x256xf32, #tpu.memory_space<vmem>>, %arg2: memref<256x512xf32, #tpu.memory_space<vmem>>, %arg3: memref<512x512xf32, #tpu.memory_space<vmem>>, %arg4: memref<512x128xf32, #tpu.memory_space<vmem>>, %arg5: memref<8x128xf32, #tpu.memory_space<vmem>>) attributes {dimension_semantics = [#tpu.dimension_semantics<parallel>], iteration_bounds = array<i64: 3>, scalar_prefetch = 0 : i64, scratch_operands = 0 : i64, tpu.core_type = #tpu.core_type<tc>, window_params = [{transform_indices = @transform_0, window_bounds = array<i64: 8, 256>}, {pipeline_mode = #tpu.pipeline_mode<synchronous>, transform_indices = @transform_1, window_bounds = array<i64: 256, 512>}, {pipeline_mode = #tpu.pipeline_mode<synchronous>, transform_indices = @transform_2, window_bounds = array<i64: 512, 512>}, {pipeline_mode = #tpu.pipeline_mode<synchronous>, transform_indices = @transform_3, window_bounds = array<i64: 512, 128>}, {transform_indices = @transform_4, window_bounds = array<i64: 8, 128>}]} {
    %c0 = arith.constant 0 : index
    %c0_0 = arith.constant 0 : index
    %0 = vector.load %arg1[%c0, %c0_0] : memref<8x256xf32, #tpu.memory_space<vmem>>, vector<8x256xf32>
    %c0_1 = arith.constant 0 : index
    %c0_2 = arith.constant 0 : index
    %1 = vector.load %arg2[%c0_1, %c0_2] : memref<256x512xf32, #tpu.memory_space<vmem>>, vector<256x512xf32>
    %cst = arith.constant dense<0.000000e+00> : vector<8x512xf32>
    %2 = tpu.matmul %0, %1, %cst {dimension_numbers = #tpu.dot_dimension_numbers<[1], [0], [0], [1], [0, 0, 1, 1], [], []>} : vector<8x256xf32>, vector<256x512xf32>, vector<8x512xf32> -> vector<8x512xf32>
    %3 = math.tanh %2 : vector<8x512xf32>
    %cst_3 = arith.constant 1.59256017 : f32
    %4 = vector.broadcast %cst_3 : f32 to vector<8x512xf32>
    %5 = arith.mulf %3, %4 : vector<8x512xf32>
    %c0_4 = arith.constant 0 : index
    %c0_5 = arith.constant 0 : index
    %6 = vector.load %arg3[%c0_4, %c0_5] : memref<512x512xf32, #tpu.memory_space<vmem>>, vector<512x512xf32>
    %cst_6 = arith.constant dense<0.000000e+00> : vector<8x512xf32>
    %7 = tpu.matmul %5, %6, %cst_6 {dimension_numbers = #tpu.dot_dimension_numbers<[1], [0], [0], [1], [0, 0, 1, 1], [], []>} : vector<8x512xf32>, vector<512x512xf32>, vector<8x512xf32> -> vector<8x512xf32>
    %8 = math.tanh %7 : vector<8x512xf32>
    %cst_7 = arith.constant 1.59256017 : f32
    %9 = vector.broadcast %cst_7 : f32 to vector<8x512xf32>
    %10 = arith.mulf %8, %9 : vector<8x512xf32>
    %c0_8 = arith.constant 0 : index
    %c0_9 = arith.constant 0 : index
    %11 = vector.load %arg4[%c0_8, %c0_9] : memref<512x128xf32, #tpu.memory_space<vmem>>, vector<512x128xf32>
    %cst_10 = arith.constant dense<0.000000e+00> : vector<8x128xf32>
    %12 = tpu.matmul %10, %11, %cst_10 {dimension_numbers = #tpu.dot_dimension_numbers<[1], [0], [0], [1], [0, 0, 1, 1], [], []>} : vector<8x512xf32>, vector<512x128xf32>, vector<8x128xf32> -> vector<8x128xf32>
    %c0_11 = arith.constant 0 : index
    %c0_12 = arith.constant 0 : index
    %13 = vector.load %arg5[%c0_11, %c0_12] : memref<8x128xf32, #tpu.memory_space<vmem>>, vector<8x128xf32>
    tpu.vector_store %arg5[%c0_11, %c0_12], %12 {strides = array<i32>} : memref<8x128xf32, #tpu.memory_space<vmem>>, vector<8x128xf32>,
    return
  }
  func.func @transform_0(%arg0: i32) -> (i32, i32) {
    %c0_i32 = arith.constant 0 : i32
    %c0_i32_0 = arith.constant 0 : i32
    return %arg0, %c0_i32 : i32, i32
  }
  func.func @transform_1(%arg0: i32) -> (i32, i32) {
    %c0_i32 = arith.constant 0 : i32
    %c0_i32_0 = arith.constant 0 : i32
    %c0_i32_1 = arith.constant 0 : i32
    return %c0_i32, %c0_i32_0 : i32, i32
  }
  func.func @transform_2(%arg0: i32) -> (i32, i32) {
    %c0_i32 = arith.constant 0 : i32
    %c0_i32_0 = arith.constant 0 : i32
    %c0_i32_1 = arith.constant 0 : i32
    return %c0_i32, %c0_i32_0 : i32, i32
  }
  func.func @transform_3(%arg0: i32) -> (i32, i32) {
    %c0_i32 = arith.constant 0 : i32
    %c0_i32_0 = arith.constant 0 : i32
    %c0_i32_1 = arith.constant 0 : i32
    return %c0_i32, %c0_i32_0 : i32, i32
  }
  func.func @transform_4(%arg0: i32) -> (i32, i32) {
    %c0_i32 = arith.constant 0 : i32
    %c0_i32_0 = arith.constant 0 : i32
    return %arg0, %c0_i32 : i32, i32
  }
}

</mosaic_0001>

<bundles_post_ra>
// kernel: tpu_custom_call.1
= control target key start
LH: loop header
LB: loop body
LE: loop exit
PB: predicated region body
PF: predicated region fallthrough
CT: control target
= control target key end

     0   :  { %9 = vsyncpa [#allocation3], 0  ;;  %s1948_s0 = inlined_call_operand.hbm [shape: f32[24,256], index: 0, kind: input, shape index: {}]   ;;  %s1949_s1 = inlined_call_operand.hbm [shape: f32[256,512], index: 1, kind: input, shape index: {}]   ;;  %s1950_s2 = inlined_call_operand.hbm [shape: f32[512,512], index: 2, kind: input, shape index: {}]   ;;  %s1951_s3 = inlined_call_operand.hbm [shape: f32[512,128], index: 3, kind: input, shape index: {}]   ;;  %s1952_s4 = inlined_call_operand.hbm [shape: f32[24,128], index: 4, kind: output, shape index: {}]  }
   0x1   :  { %11 = vsyncpa [#allocation3 + $0x1], 0 }
   0x2   :  { %12 = vsyncpa [#allocation6], 0 }
   0x3   :  { %13 = vsyncpa [#allocation9], 0 }
   0x4   :  { %14 = vsyncpa [#allocation4], 0 }
   0x5   :  { %16 = vsyncpa [#allocation4 + $0x1], 0  ;;  %s1753_s15 = smov 0   ;;  %s1755_s16 = smov 0  }
   0x6   :  { %s1757_s17 = smov 0   ;;  %s1759_s18 = smov 0  }
   0x7 LB: > { %s153_s21 = sshll.u32 %s1949_s1, 4  ;;  %s1777_s22 = sadd.s32 4294967295, %s1719_s18   ;;  %s1719_s18 = sphi %s1759_s18, %s1962_s18   ;;  %s1715_s17 = sphi %s1757_s17, %s1961_s17   ;;  %s1711_s16 = sphi %s1755_s16, %s1960_s16   ;;  %s1707_s15 = sphi %s1753_s15, %s1959_s15   ;;  %s154_s21 = int_to_ptr.hbm [resolvable:$true] %s153_s21 }
   0x8   : > { %p1409_p0 = scmp.ge.s32.totalorder %s1719_s18, 1  ;;  %p43_p1 = scmp.eq.s32.totalorder %s1777_s22, 0 }
   0x9   : > { %p142_p2 = scmp.lt.s32.totalorder %s1719_s18, 4  ;;  %s1721_s24 = smov [#allocation5]  }
   0xa   : > { %s155_s25 = sshll.u32 %s1721_s24, 4  ;;  %s167_s28 = sshll.u32 %s1950_s2, 4  ;;  %s156_s25 = int_to_ptr.vmem [resolvable:$true] %s155_s25  ;;  %s168_s28 = int_to_ptr.hbm [resolvable:$true] %s167_s28 }
   0xb   : > { %p1782_p3 = pnand %p1409_p0, %p142_p2  ;;  %s181_s6 = sshll.u32 %s1951_s3, 4  ;;  %s182_s6 = int_to_ptr.hbm [resolvable:$true] %s181_s6 }
   0xc   : > { %s1722_s7 = smov [#allocation7]   ;;  %s1723_s9 = smov 512  }
   0xd   : > { %p1444_p4 = pneg %p1782_p3  ;;  %s169_s8 = sshll.u32 %s1722_s7, 4  ;;  %s170_s8 = int_to_ptr.vmem [resolvable:$true] %s169_s8 }
   0xe   : > { %s1724_s10 = smov 32   ;;  %s1725_s11 = smov [#allocation8]  }
   0xf   : > { %p1793_p5 = pnand %p1444_p4, %p43_p1  ;;  %s183_s12 = sshll.u32 %s1725_s11, 4  ;;  %s184_s12 = int_to_ptr.vmem [resolvable:$true] %s183_s12 }
  0x10   : > { %s1726_s13 = smov 128   ;;  %s1727_s14 = smov 8  }
  0x11   : > { %1447 = dma.hbm_to_vmem [thread:$0]  (!%p1793_p5), %s154_s21, 16384, %s156_s25, [#allocation6], %s1723_s9, %s1723_s9, %s1724_s10  }
  0x12   : > { %1450 = dma.hbm_to_vmem [thread:$0]  (!%p1793_p5), %s168_s28, 32768, %s170_s8, [#allocation6], %s1723_s9, %s1723_s9, %s1724_s10  }
  0x13   : > { %1453 = dma.hbm_to_vmem [thread:$0]  (!%p1793_p5), %s182_s6, 8192, %s184_s12, [#allocation9], %s1726_s13, %s1726_s13, %s1727_s14  }
  0x14   : > { %s1408_s19 = sadd.s32 4294967294, %s1719_s18   ;;  %s1808_s20 = sadd.s32 1, %s1719_s18  }
  0x15   : > { %s29_s21 = sadd.s32 1, %s1715_s17  ;;  %s26_s24 = ssub.s32 %s1719_s18, %s1808_s20 }
  0x16   : > { %p36_p6 = scmp.ne.s32.totalorder %s1715_s17, %s1711_s16  ;;  %p27_p7 = scmp.eq.s32.totalorder %s26_s24, 0 }
  0x17   : > { %p37_p8 = scmp.eq.s32.totalorder %s1719_s18, 0  ;;  %p42_p9 = scmp.ne.s32.totalorder %s1711_s16, %s1707_s15 }
  0x18   : > { %p129_p10 = scmp.eq.s32.totalorder %s1777_s22, 2  ;;  %p135_p13 = scmp.eq.s32.totalorder %s1408_s19, 2 }
  0x19   : > { %s1820_s25 = scalar_select %p27_p7, %s1715_s17, %s29_s21  }
  0x1a   : > { %p1824_p11 = por %p43_p1, %p42_p9  ;;  %p1828_p12 = por %p129_p10, %p36_p6 }
  0x1b   : > { %p38_p0 = por %p37_p8, %p36_p6  ;;  %s197_s28 = sand.u32 1, %s1715_s17  }
  0x1c   : > { %p1833_p2 = por %p135_p13, %p42_p9  ;;  %p1465_p4 = scmp.lt.s32.totalorder %s1719_s18, 3 }
  0x1d   : > { %s1414_s30 = sshll.u32 %s197_s28, 4  ;;  %s1427_s5 = sshll.u32 %s1719_s18, 4 }
  0x1e   : > { %s206_s8 = scalar_lea.hbm %s1948_s0, %s1427_s5  ;;  %s201_s10 = scalar_lea.vmem [#allocation2], %s1414_s30 }
  0x1f   : > { %s208_s9 = sshll.u32 %s206_s8, 4  ;;  %s210_s11 = sshll.u32 %s201_s10, 4  ;;  %s209_s9 = int_to_ptr.hbm [resolvable:$true] %s208_s9  ;;  %s211_s11 = int_to_ptr.vmem [resolvable:$true] %s210_s11 }
  0x20   : > { %p1842_p5 = pnand %p1465_p4, %p38_p0  ;;  %s198_s13 = scalar_lea.sflag [#allocation3], %s197_s28 }
  0x21   : > { %s1615_s14 = sshra.s32 %s209_s9, 4  ;;  %s1622_s30 = scalar_lea.hbm %s1948_s0, 48  ;;  %s1616_s14 = int_to_ptr.hbm [resolvable:$true] %s1615_s14 }
  0x22   : > { %s1617_s19 = scalar_lea.hbm %s1616_s14, 16  ;;  %p1619_p7 = pneg %p1842_p5 }
  0x23   : > { %p1618_p6 = scmp.ne.s32.totalorder %s1616_s14, %s1617_s19  ;;  %p1623_p10 = scmp.lt.s32.totalorder %s1616_s14, %s1948_s0 }
  0x24   : > { %p1624_p13 = scmp.lt.s32.totalorder %s1622_s30, %s1617_s19 }
  0x25   : > { %p1620_p8 = pnand %p1619_p7, %p1618_p6 }
  0x26   : > { %p1625_p0 = por %p1624_p13, %p1623_p10 }
  0x27   : > { %p1621_p9 = pneg %p1620_p8 }
  0x29   : > { %p1626_p4 = pnand %p1625_p0, %p1621_p9 }
  0x2b   : > { %1629 = shalt.err (!%p1626_p4)
}
  0x2c   : > { %1457 = dma.hbm_to_vmem [thread:$0]  (!%p1842_p5), %s209_s9, 256, %s211_s11, %s198_s13  }
  0x2d   : > { %219 = sbr.rel (%p1782_p3) target bundleno = 611 (0x263), region = 36  ;;  %s1859_s28 = sand.u32 (!%p1782_p3), 1, %s1711_s16  }
  0x2e   : > { %s1418_s7 = sshll.u32 (!%p1782_p3), %s1859_s28, 4  ;;  %s222_s8 = scalar_lea.sflag (!%p1782_p3), [#allocation3], %s1859_s28 }
  0x2f   : > { %s1863_s10 = scalar_lea.vmem (!%p1782_p3), [#allocation2], %s1418_s7 }
  0x32   : > { %1690 = dma.done.wait (%p1824_p11), %s222_s8, 256  }
  0x33   : > { %1692 = vsyncadd (%p1824_p11), %s222_s8, 4294967040 }
  0x34   : > { %1694 = dma.done.wait (%p43_p1), [#allocation6], 49152  }
  0x35   : > { %1696 = vsyncadd (%p43_p1), [#allocation6], 4294918144 }
  0x36   : > { %1698 = dma.done.wait (%p43_p1), [#allocation9], 8192  }
  0x37   : > { %1700 = vsyncadd (%p43_p1), [#allocation9], 4294959104  ;;  %v328_v0 = vld [vmem:[#allocation5 + $0x1e0] sm:$0xff]  ;;  %v329_v2 = vld [vmem:[#allocation5 + $0x1e8] sm:$0xff]  ;;  %s1422_s23 = sshll.u32 %s1859_s28, 3  ;;  %s1424_s26 = sshll.u32 %s1777_s22, 3 }
  0x38   : > { %v392_v1 = vld [vmem:[#allocation5 + $0x3e0] sm:$0xff]  ;;  %396 = vmatpush.msra.mxu0 %v328_v0  ;;  %v393_v3 = vld [vmem:[#allocation5 + $0x3e8] sm:$0xff]  ;;  %436 = vmatpush.msra.mxu2 %v329_v2  ;;  %v330_v2 = vld [vmem:[#allocation5 + $0x1f0] sm:$0xff]  ;;  %s1304_s12 = scalar_lea.hbm %s1952_s4, %s1424_s26  ;;  %s265_s13 = scalar_lea.vmem [#allocation10], %s1422_s23 }
  0x39   : > { %416 = vmatpush.msra.mxu1 %v392_v1  ;;  %v324_v4 = vld [vmem:[#allocation5 + $0x1c0] sm:$0xff]  ;;  %456 = vmatpush.msra.mxu3 %v393_v3  ;;  %v325_v6 = vld [vmem:[#allocation5 + $0x1c8] sm:$0xff]  ;;  %v394_v3 = vld [vmem:[#allocation5 + $0x3f0] sm:$0xff]  ;;  %s1306_s14 = sshll.u32 %s265_s13, 4  ;;  %s1308_s19 = sshll.u32 %s1304_s12, 4  ;;  %s1307_s14 = int_to_ptr.vmem [resolvable:$true] %s1306_s14  ;;  %s1309_s19 = int_to_ptr.hbm [resolvable:$true] %s1308_s19 }
  0x3a   : > { %v388_v5 = vld [vmem:[#allocation5 + $0x3c0] sm:$0xff]  ;;  %v389_v7 = vld [vmem:[#allocation5 + $0x3c8] sm:$0xff]  ;;  %397 = vmatpush.msra.mxu0 %v324_v4  ;;  %437 = vmatpush.msra.mxu2 %v325_v6  ;;  %v331_v4 = vld [vmem:[#allocation5 + $0x1f8] sm:$0xff]  ;;  %s1294_s21 = scalar_lea.sflag [#allocation4], %s1859_s28  ;;  %s1659_s22 = sshra.s32 %s1309_s19, 4  ;;  %s1660_s22 = int_to_ptr.hbm [resolvable:$true] %s1659_s22 }
  0x3b   : > { %v320_v8 = vld [vmem:[#allocation5 + $0x1a0] sm:$0xff]  ;;  %417 = vmatpush.msra.mxu1 %v388_v5  ;;  %v321_v10 = vld [vmem:[#allocation5 + $0x1a8] sm:$0xff]  ;;  %457 = vmatpush.msra.mxu3 %v389_v7  ;;  %v395_v5 = vld [vmem:[#allocation5 + $0x3f8] sm:$0xff]  ;;  %s1661_s24 = scalar_lea.hbm %s1660_s22, 8  ;;  %s1665_s6 = scalar_lea.hbm %s1952_s4, 24 }
  0x3c   : > { %v384_v9 = vld [vmem:[#allocation5 + $0x3a0] sm:$0xff]  ;;  %v385_v11 = vld [vmem:[#allocation5 + $0x3a8] sm:$0xff]  ;;  %398 = vmatpush.msra.mxu0 %v320_v8  ;;  %438 = vmatpush.msra.mxu2 %v321_v10  ;;  %v326_v6 = vld [vmem:[#allocation5 + $0x1d0] sm:$0xff]  ;;  %p1662_p1 = scmp.ne.s32.totalorder %s1660_s22, %s1661_s24  ;;  %p1666_p5 = scmp.lt.s32.totalorder %s1660_s22, %s1952_s4 }
  0x3d   : > { %v316_v12 = vld [vmem:[#allocation5 + $0x180] sm:$0xff]  ;;  %418 = vmatpush.msra.mxu1 %v384_v9  ;;  %v317_v14 = vld [vmem:[#allocation5 + $0x188] sm:$0xff]  ;;  %458 = vmatpush.msra.mxu3 %v385_v11  ;;  %v390_v7 = vld [vmem:[#allocation5 + $0x3d0] sm:$0xff]  ;;  %p1667_p6 = scmp.lt.s32.totalorder %s1665_s6, %s1661_s24 }
  0x3e   : > { %v380_v13 = vld [vmem:[#allocation5 + $0x380] sm:$0xff]  ;;  %v381_v15 = vld [vmem:[#allocation5 + $0x388] sm:$0xff]  ;;  %399 = vmatpush.msra.mxu0 %v316_v12  ;;  %439 = vmatpush.msra.mxu2 %v317_v14  ;;  %v327_v8 = vld [vmem:[#allocation5 + $0x1d8] sm:$0xff]  ;;  %p1663_p3 = pnand %p1662_p1, %p1828_p12 }
  0x3f   : > { %v312_v16 = vld [vmem:[#allocation5 + $0x160] sm:$0xff]  ;;  %419 = vmatpush.msra.mxu1 %v380_v13  ;;  %v313_v18 = vld [vmem:[#allocation5 + $0x168] sm:$0xff]  ;;  %459 = vmatpush.msra.mxu3 %v381_v15  ;;  %v391_v9 = vld [vmem:[#allocation5 + $0x3d8] sm:$0xff]  ;;  %p1668_p7 = por %p1667_p6, %p1666_p5 }
  0x40   : > { %v376_v17 = vld [vmem:[#allocation5 + $0x360] sm:$0xff]  ;;  %v377_v19 = vld [vmem:[#allocation5 + $0x368] sm:$0xff]  ;;  %400 = vmatpush.msra.mxu0 %v312_v16  ;;  %440 = vmatpush.msra.mxu2 %v313_v18  ;;  %v322_v10 = vld [vmem:[#allocation5 + $0x1b0] sm:$0xff]  ;;  %p1664_p11 = pneg %p1663_p3 }
  0x41   : > { %v308_v20 = vld [vmem:[#allocation5 + $0x140] sm:$0xff]  ;;  %420 = vmatpush.msra.mxu1 %v376_v17  ;;  %v309_v22 = vld [vmem:[#allocation5 + $0x148] sm:$0xff]  ;;  %460 = vmatpush.msra.mxu3 %v377_v19  ;;  %v386_v11 = vld [vmem:[#allocation5 + $0x3b0] sm:$0xff] }
  0x42   : > { %v372_v21 = vld [vmem:[#allocation5 + $0x340] sm:$0xff]  ;;  %v373_v23 = vld [vmem:[#allocation5 + $0x348] sm:$0xff]  ;;  %401 = vmatpush.msra.mxu0 %v308_v20  ;;  %441 = vmatpush.msra.mxu2 %v309_v22  ;;  %v323_v12 = vld [vmem:[#allocation5 + $0x1b8] sm:$0xff]  ;;  %p1669_p8 = pnand %p1668_p7, %p1664_p11 }
  0x43   : > { %v304_v24 = vld [vmem:[#allocation5 + $0x120] sm:$0xff]  ;;  %421 = vmatpush.msra.mxu1 %v372_v21  ;;  %v305_v26 = vld [vmem:[#allocation5 + $0x128] sm:$0xff]  ;;  %461 = vmatpush.msra.mxu3 %v373_v23  ;;  %v387_v13 = vld [vmem:[#allocation5 + $0x3b8] sm:$0xff] }
  0x44   : > { %v368_v25 = vld [vmem:[#allocation5 + $0x320] sm:$0xff]  ;;  %v369_v27 = vld [vmem:[#allocation5 + $0x328] sm:$0xff]  ;;  %402 = vmatpush.msra.mxu0 %v304_v24  ;;  %442 = vmatpush.msra.mxu2 %v305_v26  ;;  %v318_v14 = vld [vmem:[#allocation5 + $0x190] sm:$0xff] }
  0x45   : > { %v300_v28 = vld [vmem:[#allocation5 + $0x100] sm:$0xff]  ;;  %422 = vmatpush.msra.mxu1 %v368_v25  ;;  %v301_v30 = vld [vmem:[#allocation5 + $0x108] sm:$0xff]  ;;  %462 = vmatpush.msra.mxu3 %v369_v27  ;;  %v382_v15 = vld [vmem:[#allocation5 + $0x390] sm:$0xff] }
  0x46   : > { %v364_v29 = vld [vmem:[#allocation5 + $0x300] sm:$0xff]  ;;  %v365_v31 = vld [vmem:[#allocation5 + $0x308] sm:$0xff]  ;;  %403 = vmatpush.msra.mxu0 %v300_v28  ;;  %443 = vmatpush.msra.mxu2 %v301_v30  ;;  %v319_v16 = vld [vmem:[#allocation5 + $0x198] sm:$0xff] }
  0x47   : > { %v296_v32 = vld [vmem:[#allocation5 + $0xe0] sm:$0xff]  ;;  %423 = vmatpush.msra.mxu1 %v364_v29  ;;  %v297_v34 = vld [vmem:[#allocation5 + $0xe8] sm:$0xff]  ;;  %463 = vmatpush.msra.mxu3 %v365_v31  ;;  %v383_v17 = vld [vmem:[#allocation5 + $0x398] sm:$0xff] }
  0x48   : > { %v360_v33 = vld [vmem:[#allocation5 + $0x2e0] sm:$0xff]  ;;  %v361_v35 = vld [vmem:[#allocation5 + $0x2e8] sm:$0xff]  ;;  %404 = vmatpush.msra.mxu0 %v296_v32  ;;  %444 = vmatpush.msra.mxu2 %v297_v34  ;;  %v314_v18 = vld [vmem:[#allocation5 + $0x170] sm:$0xff] }
  0x49   : > { %v292_v36 = vld [vmem:[#allocation5 + $0xc0] sm:$0xff]  ;;  %424 = vmatpush.msra.mxu1 %v360_v33  ;;  %v293_v38 = vld [vmem:[#allocation5 + $0xc8] sm:$0xff]  ;;  %464 = vmatpush.msra.mxu3 %v361_v35  ;;  %v378_v19 = vld [vmem:[#allocation5 + $0x370] sm:$0xff] }
  0x4a   : > { %v356_v37 = vld [vmem:[#allocation5 + $0x2c0] sm:$0xff]  ;;  %v357_v39 = vld [vmem:[#allocation5 + $0x2c8] sm:$0xff]  ;;  %405 = vmatpush.msra.mxu0 %v292_v36  ;;  %445 = vmatpush.msra.mxu2 %v293_v38  ;;  %v315_v20 = vld [vmem:[#allocation5 + $0x178] sm:$0xff] }
  0x4b   : > { %v288_v40 = vld [vmem:[#allocation5 + $0xa0] sm:$0xff]  ;;  %425 = vmatpush.msra.mxu1 %v356_v37  ;;  %v289_v42 = vld [vmem:[#allocation5 + $0xa8] sm:$0xff]  ;;  %465 = vmatpush.msra.mxu3 %v357_v39  ;;  %v379_v21 = vld [vmem:[#allocation5 + $0x378] sm:$0xff] }
  0x4c   : > { %v352_v41 = vld [vmem:[#allocation5 + $0x2a0] sm:$0xff]  ;;  %v353_v43 = vld [vmem:[#allocation5 + $0x2a8] sm:$0xff]  ;;  %406 = vmatpush.msra.mxu0 %v288_v40  ;;  %446 = vmatpush.msra.mxu2 %v289_v42  ;;  %v310_v22 = vld [vmem:[#allocation5 + $0x150] sm:$0xff] }
  0x4d   : > { %v284_v44 = vld [vmem:[#allocation5 + $0x80] sm:$0xff]  ;;  %426 = vmatpush.msra.mxu1 %v352_v41  ;;  %v285_v46 = vld [vmem:[#allocation5 + $0x88] sm:$0xff]  ;;  %466 = vmatpush.msra.mxu3 %v353_v43  ;;  %v374_v23 = vld [vmem:[#allocation5 + $0x350] sm:$0xff] }
  0x4e   : > { %v348_v45 = vld [vmem:[#allocation5 + $0x280] sm:$0xff]  ;;  %v349_v47 = vld [vmem:[#allocation5 + $0x288] sm:$0xff]  ;;  %407 = vmatpush.msra.mxu0 %v284_v44  ;;  %447 = vmatpush.msra.mxu2 %v285_v46  ;;  %v311_v24 = vld [vmem:[#allocation5 + $0x158] sm:$0xff] }
  0x4f   : > { %v280_v48 = vld [vmem:[#allocation5 + $0x60] sm:$0xff]  ;;  %427 = vmatpush.msra.mxu1 %v348_v45  ;;  %v281_v50 = vld [vmem:[#allocation5 + $0x68] sm:$0xff]  ;;  %467 = vmatpush.msra.mxu3 %v349_v47  ;;  %v375_v25 = vld [vmem:[#allocation5 + $0x358] sm:$0xff] }
  0x50   : > { %v344_v49 = vld [vmem:[#allocation5 + $0x260] sm:$0xff]  ;;  %v345_v51 = vld [vmem:[#allocation5 + $0x268] sm:$0xff]  ;;  %408 = vmatpush.msra.mxu0 %v280_v48  ;;  %448 = vmatpush.msra.mxu2 %v281_v50  ;;  %v306_v26 = vld [vmem:[#allocation5 + $0x130] sm:$0xff] }
  0x51   : > { %v276_v52 = vld [vmem:[#allocation5 + $0x40] sm:$0xff]  ;;  %428 = vmatpush.msra.mxu1 %v344_v49  ;;  %v277_v54 = vld [vmem:[#allocation5 + $0x48] sm:$0xff]  ;;  %468 = vmatpush.msra.mxu3 %v345_v51  ;;  %v370_v27 = vld [vmem:[#allocation5 + $0x330] sm:$0xff] }
  0x52   : > { %v340_v53 = vld [vmem:[#allocation5 + $0x240] sm:$0xff]  ;;  %v341_v55 = vld [vmem:[#allocation5 + $0x248] sm:$0xff]  ;;  %409 = vmatpush.msra.mxu0 %v276_v52  ;;  %449 = vmatpush.msra.mxu2 %v277_v54  ;;  %v307_v28 = vld [vmem:[#allocation5 + $0x138] sm:$0xff] }
  0x53   : > { %v272_v56 = vld [vmem:[#allocation5 + $0x20] sm:$0xff]  ;;  %429 = vmatpush.msra.mxu1 %v340_v53  ;;  %v273_v58 = vld [vmem:[#allocation5 + $0x28] sm:$0xff]  ;;  %469 = vmatpush.msra.mxu3 %v341_v55  ;;  %v371_v29 = vld [vmem:[#allocation5 + $0x338] sm:$0xff] }
  0x54   : > { %v336_v57 = vld [vmem:[#allocation5 + $0x220] sm:$0xff]  ;;  %v337_v59 = vld [vmem:[#allocation5 + $0x228] sm:$0xff]  ;;  %410 = vmatpush.msra.mxu0 %v272_v56  ;;  %450 = vmatpush.msra.mxu2 %v273_v58  ;;  %v302_v30 = vld [vmem:[#allocation5 + $0x110] sm:$0xff] }
  0x55   : > { %v268_v60 = vld [vmem:[#allocation5] sm:$0xff]  ;;  %430 = vmatpush.msra.mxu1 %v336_v57  ;;  %v269_v62 = vld [vmem:[#allocation5 + $0x8] sm:$0xff]  ;;  %470 = vmatpush.msra.mxu3 %v337_v59  ;;  %v366_v31 = vld [vmem:[#allocation5 + $0x310] sm:$0xff] }
  0x56   : > { %v332_v61 = vld [vmem:[#allocation5 + $0x200] sm:$0xff]  ;;  %v333_v63 = vld [vmem:[#allocation5 + $0x208] sm:$0xff]  ;;  %411 = vmatpush.msra.mxu0 %v268_v60  ;;  %451 = vmatpush.msra.mxu2 %v269_v62  ;;  %v303_v32 = vld [vmem:[#allocation5 + $0x118] sm:$0xff] }
  0x57   : > { %v1878_v0 = vld [vmem:[%s1863_s10] sm:$0xff]  ;;  %v1881_v1 = vld [vmem:[%s1863_s10 + $0x8] sm:$0xff]  ;;  %431 = vmatpush.msra.mxu1 %v332_v61  ;;  %471 = vmatpush.msra.mxu3 %v333_v63 }
  0x58   : > { %412 = vmatmul.f32.vlgmr.msra.gmra.mxu0 %v1878_v0  ;;  %432 = vmatmul.f32.vlgmr.msra.gmra.mxu1 %v1881_v1  ;;  %v367_v33 = vld [vmem:[#allocation5 + $0x318] sm:$0xff]  ;;  %v298_v34 = vld [vmem:[#allocation5 + $0xf0] sm:$0xff] }
  0x59   : > { %452 = vmatmul.f32.vlgmr.msra.gmra.mxu2 %v1878_v0  ;;  %472 = vmatmul.f32.vlgmr.msra.gmra.mxu3 %v1881_v1  ;;  %v362_v35 = vld [vmem:[#allocation5 + $0x2f0] sm:$0xff]  ;;  %v299_v36 = vld [vmem:[#allocation5 + $0xf8] sm:$0xff] }
  0x5a   : > { %476 = vmatpush.msrb.mxu0 %v330_v2  ;;  %496 = vmatpush.msrb.mxu1 %v394_v3  ;;  %v363_v37 = vld [vmem:[#allocation5 + $0x2f8] sm:$0xff]  ;;  %v294_v38 = vld [vmem:[#allocation5 + $0xd0] sm:$0xff] }
  0x5b   : > { %516 = vmatpush.msrb.mxu2 %v331_v4  ;;  %536 = vmatpush.msrb.mxu3 %v395_v5  ;;  %v358_v39 = vld [vmem:[#allocation5 + $0x2d0] sm:$0xff]  ;;  %v295_v40 = vld [vmem:[#allocation5 + $0xd8] sm:$0xff]  ;;  %v624_v4 = vld [vmem:[#allocation7 + $0x1e0] sm:$0xff] }
  0x5c   : > { %477 = vmatpush.msrb.mxu0 %v326_v6  ;;  %497 = vmatpush.msrb.mxu1 %v390_v7  ;;  %v359_v41 = vld [vmem:[#allocation5 + $0x2d8] sm:$0xff]  ;;  %v290_v42 = vld [vmem:[#allocation5 + $0xb0] sm:$0xff]  ;;  %v688_v5 = vld [vmem:[#allocation7 + $0x3e0] sm:$0xff] }
  0x5d   : > { %517 = vmatpush.msrb.mxu2 %v327_v8  ;;  %537 = vmatpush.msrb.mxu3 %v391_v9  ;;  %v354_v43 = vld [vmem:[#allocation5 + $0x2b0] sm:$0xff]  ;;  %v291_v44 = vld [vmem:[#allocation5 + $0xb8] sm:$0xff]  ;;  %v752_v6 = vld [vmem:[#allocation7 + $0x5e0] sm:$0xff] }
  0x5e   : > { %478 = vmatpush.msrb.mxu0 %v322_v10  ;;  %498 = vmatpush.msrb.mxu1 %v386_v11  ;;  %v355_v45 = vld [vmem:[#allocation5 + $0x2b8] sm:$0xff]  ;;  %v286_v46 = vld [vmem:[#allocation5 + $0x90] sm:$0xff]  ;;  %v620_v7 = vld [vmem:[#allocation7 + $0x1c0] sm:$0xff] }
  0x5f   : > { %518 = vmatpush.msrb.mxu2 %v323_v12  ;;  %538 = vmatpush.msrb.mxu3 %v387_v13  ;;  %v350_v47 = vld [vmem:[#allocation5 + $0x290] sm:$0xff]  ;;  %v287_v48 = vld [vmem:[#allocation5 + $0x98] sm:$0xff]  ;;  %v684_v8 = vld [vmem:[#allocation7 + $0x3c0] sm:$0xff] }
  0x60   : > { %479 = vmatpush.msrb.mxu0 %v318_v14  ;;  %499 = vmatpush.msrb.mxu1 %v382_v15  ;;  %v351_v49 = vld [vmem:[#allocation5 + $0x298] sm:$0xff]  ;;  %v282_v50 = vld [vmem:[#allocation5 + $0x70] sm:$0xff]  ;;  %v748_v9 = vld [vmem:[#allocation7 + $0x5c0] sm:$0xff] }
  0x61   : > { %519 = vmatpush.msrb.mxu2 %v319_v16  ;;  %539 = vmatpush.msrb.mxu3 %v383_v17  ;;  %v346_v51 = vld [vmem:[#allocation5 + $0x270] sm:$0xff]  ;;  %v283_v52 = vld [vmem:[#allocation5 + $0x78] sm:$0xff]  ;;  %v616_v10 = vld [vmem:[#allocation7 + $0x1a0] sm:$0xff] }
  0x62   : > { %480 = vmatpush.msrb.mxu0 %v314_v18  ;;  %500 = vmatpush.msrb.mxu1 %v378_v19  ;;  %v347_v53 = vld [vmem:[#allocation5 + $0x278] sm:$0xff]  ;;  %v278_v54 = vld [vmem:[#allocation5 + $0x50] sm:$0xff]  ;;  %v680_v11 = vld [vmem:[#allocation7 + $0x3a0] sm:$0xff] }
  0x63   : > { %520 = vmatpush.msrb.mxu2 %v315_v20  ;;  %540 = vmatpush.msrb.mxu3 %v379_v21  ;;  %v342_v55 = vld [vmem:[#allocation5 + $0x250] sm:$0xff]  ;;  %v279_v56 = vld [vmem:[#allocation5 + $0x58] sm:$0xff]  ;;  %v744_v12 = vld [vmem:[#allocation7 + $0x5a0] sm:$0xff] }
  0x64   : > { %481 = vmatpush.msrb.mxu0 %v310_v22  ;;  %501 = vmatpush.msrb.mxu1 %v374_v23  ;;  %v343_v57 = vld [vmem:[#allocation5 + $0x258] sm:$0xff]  ;;  %v274_v58 = vld [vmem:[#allocation5 + $0x30] sm:$0xff]  ;;  %v612_v13 = vld [vmem:[#allocation7 + $0x180] sm:$0xff] }
  0x65   : > { %521 = vmatpush.msrb.mxu2 %v311_v24  ;;  %541 = vmatpush.msrb.mxu3 %v375_v25  ;;  %v338_v59 = vld [vmem:[#allocation5 + $0x230] sm:$0xff]  ;;  %v275_v60 = vld [vmem:[#allocation5 + $0x38] sm:$0xff]  ;;  %v676_v14 = vld [vmem:[#allocation7 + $0x380] sm:$0xff] }
  0x66   : > { %482 = vmatpush.msrb.mxu0 %v306_v26  ;;  %502 = vmatpush.msrb.mxu1 %v370_v27  ;;  %v339_v61 = vld [vmem:[#allocation5 + $0x238] sm:$0xff]  ;;  %v270_v62 = vld [vmem:[#allocation5 + $0x10] sm:$0xff]  ;;  %v816_v15 = vld [vmem:[#allocation7 + $0x7e0] sm:$0xff] }
  0x67   : > { %522 = vmatpush.msrb.mxu2 %v307_v28  ;;  %542 = vmatpush.msrb.mxu3 %v371_v29  ;;  %v334_v63 = vld [vmem:[#allocation5 + $0x210] sm:$0xff]  ;;  %v271_v2 = vld [vmem:[#allocation5 + $0x18] sm:$0xff]  ;;  %v608_v16 = vld [vmem:[#allocation7 + $0x160] sm:$0xff] }
  0x68   : > { %483 = vmatpush.msrb.mxu0 %v302_v30  ;;  %503 = vmatpush.msrb.mxu1 %v366_v31  ;;  %v335_v3 = vld [vmem:[#allocation5 + $0x218] sm:$0xff]  ;;  %v812_v17 = vld [vmem:[#allocation7 + $0x7c0] sm:$0xff] }
  0x69   : > { %523 = vmatpush.msrb.mxu2 %v303_v32  ;;  %543 = vmatpush.msrb.mxu3 %v367_v33  ;;  %v736_v18 = vld [vmem:[#allocation7 + $0x560] sm:$0xff] }
  0x6a   : > { %484 = vmatpush.msrb.mxu0 %v298_v34  ;;  %504 = vmatpush.msrb.mxu1 %v362_v35  ;;  %v604_v19 = vld [vmem:[#allocation7 + $0x140] sm:$0xff] }
  0x6b   : > { %524 = vmatpush.msrb.mxu2 %v299_v36  ;;  %544 = vmatpush.msrb.mxu3 %v363_v37  ;;  %v668_v20 = vld [vmem:[#allocation7 + $0x340] sm:$0xff] }
  0x6c   : > { %485 = vmatpush.msrb.mxu0 %v294_v38  ;;  %505 = vmatpush.msrb.mxu1 %v358_v39  ;;  %v808_v21 = vld [vmem:[#allocation7 + $0x7a0] sm:$0xff] }
  0x6d   : > { %525 = vmatpush.msrb.mxu2 %v295_v40  ;;  %545 = vmatpush.msrb.mxu3 %v359_v41  ;;  %v732_v22 = vld [vmem:[#allocation7 + $0x540] sm:$0xff] }
  0x6e   : > { %486 = vmatpush.msrb.mxu0 %v290_v42  ;;  %506 = vmatpush.msrb.mxu1 %v354_v43  ;;  %v600_v23 = vld [vmem:[#allocation7 + $0x120] sm:$0xff] }
  0x6f   : > { %526 = vmatpush.msrb.mxu2 %v291_v44  ;;  %546 = vmatpush.msrb.mxu3 %v355_v45  ;;  %v664_v24 = vld [vmem:[#allocation7 + $0x320] sm:$0xff] }
  0x70   : > { %487 = vmatpush.msrb.mxu0 %v286_v46  ;;  %507 = vmatpush.msrb.mxu1 %v350_v47  ;;  %v804_v25 = vld [vmem:[#allocation7 + $0x780] sm:$0xff] }
  0x71   : > { %527 = vmatpush.msrb.mxu2 %v287_v48  ;;  %547 = vmatpush.msrb.mxu3 %v351_v49  ;;  %v728_v26 = vld [vmem:[#allocation7 + $0x520] sm:$0xff] }
  0x72   : > { %488 = vmatpush.msrb.mxu0 %v282_v50  ;;  %508 = vmatpush.msrb.mxu1 %v346_v51  ;;  %v596_v27 = vld [vmem:[#allocation7 + $0x100] sm:$0xff]  ;;  %v625_v51 = vld [vmem:[#allocation7 + $0x1e8] sm:$0xff] }
  0x73   : > { %528 = vmatpush.msrb.mxu2 %v283_v52  ;;  %548 = vmatpush.msrb.mxu3 %v347_v53  ;;  %v660_v28 = vld [vmem:[#allocation7 + $0x300] sm:$0xff]  ;;  %v689_v52 = vld [vmem:[#allocation7 + $0x3e8] sm:$0xff] }
  0x74   : > { %489 = vmatpush.msrb.mxu0 %v278_v54  ;;  %509 = vmatpush.msrb.mxu1 %v342_v55  ;;  %v800_v29 = vld [vmem:[#allocation7 + $0x760] sm:$0xff]  ;;  %v621_v53 = vld [vmem:[#allocation7 + $0x1c8] sm:$0xff] }
  0x75   : > { %529 = vmatpush.msrb.mxu2 %v279_v56  ;;  %549 = vmatpush.msrb.mxu3 %v343_v57  ;;  %v724_v30 = vld [vmem:[#allocation7 + $0x500] sm:$0xff]  ;;  %v685_v54 = vld [vmem:[#allocation7 + $0x3c8] sm:$0xff] }
  0x76   : > { %490 = vmatpush.msrb.mxu0 %v274_v58  ;;  %510 = vmatpush.msrb.mxu1 %v338_v59  ;;  %v592_v31 = vld [vmem:[#allocation7 + $0xe0] sm:$0xff]  ;;  %v617_v55 = vld [vmem:[#allocation7 + $0x1a8] sm:$0xff] }
  0x77   : > { %530 = vmatpush.msrb.mxu2 %v275_v60  ;;  %550 = vmatpush.msrb.mxu3 %v339_v61  ;;  %v656_v32 = vld [vmem:[#allocation7 + $0x2e0] sm:$0xff]  ;;  %v681_v56 = vld [vmem:[#allocation7 + $0x3a8] sm:$0xff] }
  0x78   : > { %491 = vmatpush.msrb.mxu0 %v270_v62  ;;  %511 = vmatpush.msrb.mxu1 %v334_v63  ;;  %v796_v33 = vld [vmem:[#allocation7 + $0x740] sm:$0xff]  ;;  %v613_v57 = vld [vmem:[#allocation7 + $0x188] sm:$0xff] }
  0x79   : > { %531 = vmatpush.msrb.mxu2 %v271_v2  ;;  %551 = vmatpush.msrb.mxu3 %v335_v3  ;;  %v720_v34 = vld [vmem:[#allocation7 + $0x4e0] sm:$0xff]  ;;  %v677_v58 = vld [vmem:[#allocation7 + $0x388] sm:$0xff] }
  0x7a   : > { %492 = vmatmul.f32.vlgmr.msrb.gmra.mxu0 %v1878_v0  ;;  %512 = vmatmul.f32.vlgmr.msrb.gmra.mxu1 %v1881_v1  ;;  %v588_v35 = vld [vmem:[#allocation7 + $0xc0] sm:$0xff]  ;;  %v609_v59 = vld [vmem:[#allocation7 + $0x168] sm:$0xff] }
  0x7b   : > { %532 = vmatmul.f32.vlgmr.msrb.gmra.mxu2 %v1878_v0  ;;  %552 = vmatmul.f32.vlgmr.msrb.gmra.mxu3 %v1881_v1  ;;  %v740_v0 = vld [vmem:[#allocation7 + $0x580] sm:$0xff]  ;;  %v673_v60 = vld [vmem:[#allocation7 + $0x368] sm:$0xff] }
  0x7c   : > { %820 = vmatpush.msra.mxu0 %v624_v4  ;;  %840 = vmatpush.msra.mxu1 %v688_v5  ;;  %v672_v1 = vld [vmem:[#allocation7 + $0x360] sm:$0xff]  ;;  %v605_v61 = vld [vmem:[#allocation7 + $0x148] sm:$0xff] }
  0x7d   : > { %860 = vmatpush.msra.mxu2 %v752_v6  ;;  %880 = vmatpush.msra.mxu3 %v816_v15  ;;  %v652_v36 = vld [vmem:[#allocation7 + $0x2c0] sm:$0xff]  ;;  %v669_v62 = vld [vmem:[#allocation7 + $0x348] sm:$0xff] }
  0x7e   : > { %821 = vmatpush.msra.mxu0 %v620_v7  ;;  %841 = vmatpush.msra.mxu1 %v684_v8  ;;  %v792_v37 = vld [vmem:[#allocation7 + $0x720] sm:$0xff]  ;;  %v601_v63 = vld [vmem:[#allocation7 + $0x128] sm:$0xff] }
  0x7f   : > { %861 = vmatpush.msra.mxu2 %v748_v9  ;;  %881 = vmatpush.msra.mxu3 %v812_v17  ;;  %v716_v38 = vld [vmem:[#allocation7 + $0x4c0] sm:$0xff]  ;;  %v665_v2 = vld [vmem:[#allocation7 + $0x328] sm:$0xff] }
  0x80   : > { %822 = vmatpush.msra.mxu0 %v616_v10  ;;  %842 = vmatpush.msra.mxu1 %v680_v11  ;;  %v584_v39 = vld [vmem:[#allocation7 + $0xa0] sm:$0xff]  ;;  %v597_v3 = vld [vmem:[#allocation7 + $0x108] sm:$0xff] }
  0x81   : > { %862 = vmatpush.msra.mxu2 %v744_v12  ;;  %882 = vmatpush.msra.mxu3 %v808_v21  ;;  %v648_v40 = vld [vmem:[#allocation7 + $0x2a0] sm:$0xff]  ;;  %v593_v4 = vld [vmem:[#allocation7 + $0xe8] sm:$0xff] }
  0x82   : > { %823 = vmatpush.msra.mxu0 %v612_v13  ;;  %843 = vmatpush.msra.mxu1 %v676_v14  ;;  %v580_v41 = vld [vmem:[#allocation7 + $0x80] sm:$0xff]  ;;  %v589_v5 = vld [vmem:[#allocation7 + $0xc8] sm:$0xff] }
  0x83   : > { %863 = vmatpush.msra.mxu2 %v740_v0  ;;  %883 = vmatpush.msra.mxu3 %v804_v25  ;;  %v644_v42 = vld [vmem:[#allocation7 + $0x280] sm:$0xff]  ;;  %v585_v8 = vld [vmem:[#allocation7 + $0xa8] sm:$0xff] }
  0x84   : > { %824 = vmatpush.msra.mxu0 %v608_v16  ;;  %844 = vmatpush.msra.mxu1 %v672_v1  ;;  %v576_v43 = vld [vmem:[#allocation7 + $0x60] sm:$0xff]  ;;  %v661_v9 = vld [vmem:[#allocation7 + $0x308] sm:$0xff] }
  0x85   : > { %864 = vmatpush.msra.mxu2 %v736_v18  ;;  %884 = vmatpush.msra.mxu3 %v800_v29  ;;  %v640_v44 = vld [vmem:[#allocation7 + $0x260] sm:$0xff]  ;;  %v581_v12 = vld [vmem:[#allocation7 + $0x88] sm:$0xff] }
  0x86   : > { %825 = vmatpush.msra.mxu0 %v604_v19  ;;  %845 = vmatpush.msra.mxu1 %v668_v20  ;;  %v572_v45 = vld [vmem:[#allocation7 + $0x40] sm:$0xff]  ;;  %v657_v13 = vld [vmem:[#allocation7 + $0x2e8] sm:$0xff] }
  0x87   : > { %865 = vmatpush.msra.mxu2 %v732_v22  ;;  %885 = vmatpush.msra.mxu3 %v796_v33  ;;  %v636_v46 = vld [vmem:[#allocation7 + $0x240] sm:$0xff]  ;;  %v577_v0 = vld [vmem:[#allocation7 + $0x68] sm:$0xff] }
  0x88   : > { %826 = vmatpush.msra.mxu0 %v600_v23  ;;  %846 = vmatpush.msra.mxu1 %v664_v24  ;;  %v568_v47 = vld [vmem:[#allocation7 + $0x20] sm:$0xff]  ;;  %v653_v16 = vld [vmem:[#allocation7 + $0x2c8] sm:$0xff] }
  0x89   : > { %866 = vmatpush.msra.mxu2 %v728_v26  ;;  %886 = vmatpush.msra.mxu3 %v792_v37  ;;  %v632_v48 = vld [vmem:[#allocation7 + $0x220] sm:$0xff]  ;;  %v573_v18 = vld [vmem:[#allocation7 + $0x48] sm:$0xff] }
  0x8a   : > { %827 = vmatpush.msra.mxu0 %v596_v27  ;;  %847 = vmatpush.msra.mxu1 %v660_v28  ;;  %v564_v49 = vld [vmem:[#allocation7] sm:$0xff]  ;;  %v649_v19 = vld [vmem:[#allocation7 + $0x2a8] sm:$0xff] }
  0x8b   : > { %867 = vmatpush.msra.mxu2 %v724_v30  ;;  %v628_v50 = vld [vmem:[#allocation7 + $0x200] sm:$0xff]  ;;  %v569_v22 = vld [vmem:[#allocation7 + $0x28] sm:$0xff] }
  0x8c   : > { %828 = vmatpush.msra.mxu0 %v592_v31  ;;  %848 = vmatpush.msra.mxu1 %v656_v32  ;;  %v712_v6 = vld [vmem:[#allocation7 + $0x4a0] sm:$0xff]  ;;  %v645_v23 = vld [vmem:[#allocation7 + $0x288] sm:$0xff] }
  0x8d   : > { %868 = vmatpush.msra.mxu2 %v720_v34  ;;  %v788_v7 = vld [vmem:[#allocation7 + $0x700] sm:$0xff]  ;;  %v565_v26 = vld [vmem:[#allocation7 + $0x8] sm:$0xff] }
  0x8e   : > { %829 = vmatpush.msra.mxu0 %v588_v35  ;;  %849 = vmatpush.msra.mxu1 %v652_v36  ;;  %v708_v10 = vld [vmem:[#allocation7 + $0x480] sm:$0xff]  ;;  %v641_v27 = vld [vmem:[#allocation7 + $0x268] sm:$0xff] }
  0x8f   : > { %869 = vmatpush.msra.mxu2 %v716_v38  ;;  %887 = vmatpush.msra.mxu3 %v788_v7  ;;  %v784_v11 = vld [vmem:[#allocation7 + $0x6e0] sm:$0xff]  ;;  %v753_v28 = vld [vmem:[#allocation7 + $0x5e8] sm:$0xff] }
  0x90   : > { %830 = vmatpush.msra.mxu0 %v584_v39  ;;  %850 = vmatpush.msra.mxu1 %v648_v40  ;;  %v704_v14 = vld [vmem:[#allocation7 + $0x460] sm:$0xff]  ;;  %v637_v30 = vld [vmem:[#allocation7 + $0x248] sm:$0xff] }
  0x91   : > { %870 = vmatpush.msra.mxu2 %v712_v6  ;;  %888 = vmatpush.msra.mxu3 %v784_v11  ;;  %v780_v15 = vld [vmem:[#allocation7 + $0x6c0] sm:$0xff]  ;;  %v749_v31 = vld [vmem:[#allocation7 + $0x5c8] sm:$0xff]  ;;  %v618_v11 = vld [vmem:[#allocation7 + $0x1b0] sm:$0xff] }
  0x92   : > { %831 = vmatpush.msra.mxu0 %v580_v41  ;;  %851 = vmatpush.msra.mxu1 %v644_v42  ;;  %v700_v1 = vld [vmem:[#allocation7 + $0x440] sm:$0xff]  ;;  %v633_v33 = vld [vmem:[#allocation7 + $0x228] sm:$0xff] }
  0x93   : > { %871 = vmatpush.msra.mxu2 %v708_v10  ;;  %889 = vmatpush.msra.mxu3 %v780_v15  ;;  %v776_v17 = vld [vmem:[#allocation7 + $0x6a0] sm:$0xff]  ;;  %v745_v34 = vld [vmem:[#allocation7 + $0x5a8] sm:$0xff] }
  0x94   : > { %832 = vmatpush.msra.mxu0 %v576_v43  ;;  %852 = vmatpush.msra.mxu1 %v640_v44  ;;  %v696_v20 = vld [vmem:[#allocation7 + $0x420] sm:$0xff]  ;;  %v629_v36 = vld [vmem:[#allocation7 + $0x208] sm:$0xff] }
  0x95   : > { %872 = vmatpush.msra.mxu2 %v704_v14  ;;  %890 = vmatpush.msra.mxu3 %v776_v17  ;;  %v772_v21 = vld [vmem:[#allocation7 + $0x680] sm:$0xff]  ;;  %v741_v37 = vld [vmem:[#allocation7 + $0x588] sm:$0xff]  ;;  %v614_v14 = vld [vmem:[#allocation7 + $0x190] sm:$0xff] }
  0x96   : > { %833 = vmatpush.msra.mxu0 %v572_v45  ;;  %853 = vmatpush.msra.mxu1 %v636_v46  ;;  %v692_v24 = vld [vmem:[#allocation7 + $0x400] sm:$0xff]  ;;  %v817_v38 = vld [vmem:[#allocation7 + $0x7e8] sm:$0xff]  ;;  %v686_v17 = vld [vmem:[#allocation7 + $0x3d0] sm:$0xff] }
  0x97   : > { %873 = vmatpush.msra.mxu2 %v700_v1  ;;  %891 = vmatpush.msra.mxu3 %v772_v21  ;;  %v768_v25 = vld [vmem:[#allocation7 + $0x660] sm:$0xff]  ;;  %v813_v39 = vld [vmem:[#allocation7 + $0x7c8] sm:$0xff]  ;;  %v610_v1 = vld [vmem:[#allocation7 + $0x170] sm:$0xff] }
  0x98   : > { %834 = vmatpush.msra.mxu0 %v568_v47  ;;  %854 = vmatpush.msra.mxu1 %v632_v48  ;;  %v764_v29 = vld [vmem:[#allocation7 + $0x640] sm:$0xff]  ;;  %v737_v40 = vld [vmem:[#allocation7 + $0x568] sm:$0xff]  ;;  %v602_v21 = vld [vmem:[#allocation7 + $0x130] sm:$0xff] }
  0x99   : > { %874 = vmatpush.msra.mxu2 %v696_v20  ;;  %892 = vmatpush.msra.mxu3 %v768_v25  ;;  %v760_v32 = vld [vmem:[#allocation7 + $0x620] sm:$0xff]  ;;  %v809_v41 = vld [vmem:[#allocation7 + $0x7a8] sm:$0xff]  ;;  %v682_v20 = vld [vmem:[#allocation7 + $0x3b0] sm:$0xff] }
  0x9a   : > { %835 = vmatpush.msra.mxu0 %v564_v49  ;;  %855 = vmatpush.msra.mxu1 %v628_v50  ;;  %v756_v35 = vld [vmem:[#allocation7 + $0x600] sm:$0xff]  ;;  %v733_v42 = vld [vmem:[#allocation7 + $0x548] sm:$0xff]  ;;  %v594_v25 = vld [vmem:[#allocation7 + $0xf0] sm:$0xff] }
  0x9b   : > { %875 = vmatpush.msra.mxu2 %v692_v24  ;;  %893 = vmatpush.msra.mxu3 %v764_v29  ;;  %v805_v43 = vld [vmem:[#allocation7 + $0x788] sm:$0xff]  ;;  %v674_v24 = vld [vmem:[#allocation7 + $0x370] sm:$0xff] }
  0x9c   : > { %900 = vmatpush.msrb.mxu0 %v625_v51  ;;  %920 = vmatpush.msrb.mxu1 %v689_v52  ;;  %v729_v44 = vld [vmem:[#allocation7 + $0x528] sm:$0xff]  ;;  %v586_v29 = vld [vmem:[#allocation7 + $0xb0] sm:$0xff] }
  0x9d   : > { %940 = vmatpush.msrb.mxu2 %v753_v28  ;;  %894 = vmatpush.msra.mxu3 %v760_v32  ;;  %v801_v45 = vld [vmem:[#allocation7 + $0x768] sm:$0xff]  ;;  %v666_v28 = vld [vmem:[#allocation7 + $0x330] sm:$0xff] }
  0x9e   : > { %901 = vmatpush.msrb.mxu0 %v621_v53  ;;  %921 = vmatpush.msrb.mxu1 %v685_v54  ;;  %v725_v46 = vld [vmem:[#allocation7 + $0x508] sm:$0xff]  ;;  %v658_v32 = vld [vmem:[#allocation7 + $0x2f0] sm:$0xff] }
  0x9f   : > { %941 = vmatpush.msrb.mxu2 %v749_v31  ;;  %895 = vmatpush.msra.mxu3 %v756_v35  ;;  %v797_v47 = vld [vmem:[#allocation7 + $0x748] sm:$0xff]  ;;  %v582_v31 = vld [vmem:[#allocation7 + $0x90] sm:$0xff] }
  0xa0   : > { %902 = vmatpush.msrb.mxu0 %v617_v55  ;;  %922 = vmatpush.msrb.mxu1 %v681_v56  ;;  %v721_v48 = vld [vmem:[#allocation7 + $0x4e8] sm:$0xff]  ;;  %v578_v35 = vld [vmem:[#allocation7 + $0x70] sm:$0xff] }
  0xa1   : > { %942 = vmatpush.msrb.mxu2 %v745_v34  ;;  %960 = vmatpush.msrb.mxu3 %v817_v38  ;;  %v793_v49 = vld [vmem:[#allocation7 + $0x728] sm:$0xff]  ;;  %v574_v38 = vld [vmem:[#allocation7 + $0x50] sm:$0xff] }
  0xa2   : > { %903 = vmatpush.msrb.mxu0 %v613_v57  ;;  %923 = vmatpush.msrb.mxu1 %v677_v58  ;;  %v717_v52 = vld [vmem:[#allocation7 + $0x4c8] sm:$0xff] }
  0xa3   : > { %943 = vmatpush.msrb.mxu2 %v741_v37  ;;  %961 = vmatpush.msrb.mxu3 %v813_v39  ;;  %v713_v54 = vld [vmem:[#allocation7 + $0x4a8] sm:$0xff]  ;;  %v654_v37 = vld [vmem:[#allocation7 + $0x2d0] sm:$0xff] }
  0xa4   : > { %904 = vmatpush.msrb.mxu0 %v609_v59  ;;  %924 = vmatpush.msrb.mxu1 %v673_v60  ;;  %v789_v55 = vld [vmem:[#allocation7 + $0x708] sm:$0xff]  ;;  %v650_v39 = vld [vmem:[#allocation7 + $0x2b0] sm:$0xff] }
  0xa5   : > { %944 = vmatpush.msrb.mxu2 %v737_v40  ;;  %962 = vmatpush.msrb.mxu3 %v809_v41  ;;  %v709_v56 = vld [vmem:[#allocation7 + $0x488] sm:$0xff]  ;;  %v570_v40 = vld [vmem:[#allocation7 + $0x30] sm:$0xff] }
  0xa6   : > { %905 = vmatpush.msrb.mxu0 %v605_v61  ;;  %925 = vmatpush.msrb.mxu1 %v669_v62  ;;  %v785_v57 = vld [vmem:[#allocation7 + $0x6e8] sm:$0xff]  ;;  %v646_v41 = vld [vmem:[#allocation7 + $0x290] sm:$0xff] }
  0xa7   : > { %945 = vmatpush.msrb.mxu2 %v733_v42  ;;  %963 = vmatpush.msrb.mxu3 %v805_v43  ;;  %v705_v60 = vld [vmem:[#allocation7 + $0x468] sm:$0xff]  ;;  %v566_v42 = vld [vmem:[#allocation7 + $0x10] sm:$0xff] }
  0xa8   : > { %906 = vmatpush.msrb.mxu0 %v601_v63  ;;  %926 = vmatpush.msrb.mxu1 %v665_v2  ;;  %v781_v61 = vld [vmem:[#allocation7 + $0x6c8] sm:$0xff] }
  0xa9   : > { %946 = vmatpush.msrb.mxu2 %v729_v44  ;;  %964 = vmatpush.msrb.mxu3 %v801_v45  ;;  %v701_v2 = vld [vmem:[#allocation7 + $0x448] sm:$0xff]  ;;  %v642_v45 = vld [vmem:[#allocation7 + $0x270] sm:$0xff] }
  0xaa   : > { %907 = vmatpush.msrb.mxu0 %v597_v3  ;;  %927 = vmatpush.msrb.mxu1 %v661_v9  ;;  %v777_v3 = vld [vmem:[#allocation7 + $0x6a8] sm:$0xff] }
  0xab   : > { %947 = vmatpush.msrb.mxu2 %v725_v46  ;;  %965 = vmatpush.msrb.mxu3 %v797_v47  ;;  %v697_v6 = vld [vmem:[#allocation7 + $0x428] sm:$0xff]  ;;  %v627_v47 = vld [vmem:[#allocation7 + $0x1f8] sm:$0xff] }
  0xac   : > { %908 = vmatpush.msrb.mxu0 %v593_v4  ;;  %928 = vmatpush.msrb.mxu1 %v657_v13  ;;  %v773_v7 = vld [vmem:[#allocation7 + $0x688] sm:$0xff] }
  0xad   : > { %948 = vmatpush.msrb.mxu2 %v721_v48  ;;  %966 = vmatpush.msrb.mxu3 %v793_v49  ;;  %v693_v9 = vld [vmem:[#allocation7 + $0x408] sm:$0xff]  ;;  %v638_v49 = vld [vmem:[#allocation7 + $0x250] sm:$0xff] }
  0xae   : > { %909 = vmatpush.msrb.mxu0 %v589_v5  ;;  %929 = vmatpush.msrb.mxu1 %v653_v16  ;;  %v626_v5 = vld [vmem:[#allocation7 + $0x1f0] sm:$0xff]  ;;  %v769_v10 = vld [vmem:[#allocation7 + $0x668] sm:$0xff] }
  0xaf   : > { %949 = vmatpush.msrb.mxu2 %v717_v52  ;;  %967 = vmatpush.msrb.mxu3 %v789_v55  ;;  %v761_v16 = vld [vmem:[#allocation7 + $0x628] sm:$0xff]  ;;  %v623_v52 = vld [vmem:[#allocation7 + $0x1d8] sm:$0xff] }
  0xb0   : > { %910 = vmatpush.msrb.mxu0 %v585_v8  ;;  %930 = vmatpush.msrb.mxu1 %v649_v19  ;;  %v622_v8 = vld [vmem:[#allocation7 + $0x1d0] sm:$0xff]  ;;  %v619_v55 = vld [vmem:[#allocation7 + $0x1b8] sm:$0xff] }
  0xb1   : > { %950 = vmatpush.msrb.mxu2 %v713_v54  ;;  %968 = vmatpush.msrb.mxu3 %v785_v57  ;;  %v606_v19 = vld [vmem:[#allocation7 + $0x150] sm:$0xff] }
  0xb2   : > { %911 = vmatpush.msrb.mxu0 %v581_v12  ;;  %931 = vmatpush.msrb.mxu1 %v645_v23  ;;  %v765_v12 = vld [vmem:[#allocation7 + $0x648] sm:$0xff]  ;;  %v598_v23 = vld [vmem:[#allocation7 + $0x110] sm:$0xff] }
  0xb3   : > { %951 = vmatpush.msrb.mxu2 %v709_v56  ;;  %969 = vmatpush.msrb.mxu3 %v781_v61  ;;  %v750_v54 = vld [vmem:[#allocation7 + $0x5d0] sm:$0xff] }
  0xb4   : > { %912 = vmatpush.msrb.mxu0 %v577_v0  ;;  %932 = vmatpush.msrb.mxu1 %v641_v27  ;;  %v690_v0 = vld [vmem:[#allocation7 + $0x3f0] sm:$0xff] }
  0xb5   : > { %952 = vmatpush.msrb.mxu2 %v705_v60  ;;  %970 = vmatpush.msrb.mxu3 %v777_v3  ;;  %v590_v27 = vld [vmem:[#allocation7 + $0xd0] sm:$0xff]  ;;  %v611_v3 = vld [vmem:[#allocation7 + $0x178] sm:$0xff] }
  0xb6   : > { %913 = vmatpush.msrb.mxu0 %v573_v18  ;;  %933 = vmatpush.msrb.mxu1 %v637_v30  ;;  %v757_v18 = vld [vmem:[#allocation7 + $0x608] sm:$0xff]  ;;  %v662_v30 = vld [vmem:[#allocation7 + $0x310] sm:$0xff] }
  0xb7   : > { %953 = vmatpush.msrb.mxu2 %v701_v2  ;;  %971 = vmatpush.msrb.mxu3 %v773_v7  ;;  %v630_v56 = vld [vmem:[#allocation7 + $0x210] sm:$0xff] }
  0xb8   : > { %914 = vmatpush.msrb.mxu0 %v569_v22  ;;  %934 = vmatpush.msrb.mxu1 %v633_v33  ;;  %v678_v22 = vld [vmem:[#allocation7 + $0x390] sm:$0xff] }
  0xb9   : > { %954 = vmatpush.msrb.mxu2 %v697_v6  ;;  %972 = vmatpush.msrb.mxu3 %v769_v10  ;;  %v746_v57 = vld [vmem:[#allocation7 + $0x5b0] sm:$0xff]  ;;  %v687_v6 = vld [vmem:[#allocation7 + $0x3d8] sm:$0xff] }
  0xba   : > { %915 = vmatpush.msrb.mxu0 %v565_v26  ;;  %935 = vmatpush.msrb.mxu1 %v629_v36  ;;  %v670_v26 = vld [vmem:[#allocation7 + $0x350] sm:$0xff]  ;;  %v683_v10 = vld [vmem:[#allocation7 + $0x3b8] sm:$0xff] }
  0xbb   : > { %955 = vmatpush.msrb.mxu2 %v693_v9  ;;  %973 = vmatpush.msrb.mxu3 %v765_v12  ;;  %v742_v61 = vld [vmem:[#allocation7 + $0x590] sm:$0xff]  ;;  %v603_v12 = vld [vmem:[#allocation7 + $0x138] sm:$0xff] }
  0xbc   : > { %v738_v2 = vld [vmem:[#allocation7 + $0x570] sm:$0xff] }
  0xbd   : > { %974 = vmatpush.msrb.mxu3 %v761_v16  ;;  %v734_v7 = vld [vmem:[#allocation7 + $0x550] sm:$0xff] }
  0xbe   : > { %v810_v9 = vld [vmem:[#allocation7 + $0x7b0] sm:$0xff] }
  0xbf   : > { %975 = vmatpush.msrb.mxu3 %v757_v18  ;;  %v802_v16 = vld [vmem:[#allocation7 + $0x770] sm:$0xff] }
  0xc0   : > { %v722_v18 = vld [vmem:[#allocation7 + $0x4f0] sm:$0xff] }
  0xd5   : > { %v413_v50 = vpop.f32.mrf.mxu0  ;;  %v433_v51 = vpop.f32.mrf.mxu1 }
  0xd6   : > { %v434_v53 = vadd.f32 %v433_v51, %v413_v50  ;;  %v754_v51 = vld [vmem:[#allocation7 + $0x5f0] sm:$0xff] }
  0xd8   : > { %1509 = vtanh.f32 %v434_v53  ;;  %v634_v53 = vld [vmem:[#allocation7 + $0x230] sm:$0xff] }
  0xdc   : > { %v453_v58 = vpop.f32.mrf.mxu2  ;;  %v473_v59 = vpop.f32.mrf.mxu3 }
  0xdd   : > { %v474_v62 = vadd.f32 %v473_v59, %v453_v58  ;;  %v615_v58 = vld [vmem:[#allocation7 + $0x198] sm:$0xff] }
  0xde   : > { %v1510_v63 = vpop.eup %1509  ;;  %v691_v59 = vld [vmem:[#allocation7 + $0x3f8] sm:$0xff] }
  0xdf   : > { %v1891_v4 = vmul.f32 1.5925602, %v1510_v63  ;;  %1511 = vtanh.f32 %v474_v62  ;;  %v818_v63 = vld [vmem:[#allocation7 + $0x7f0] sm:$0xff] }
  0xe1   : > { %836 = vmatmul.f32.vlgmr.msra.gmra.mxu0 %v1891_v4 }
  0xe2   : > { %980 = vmatpush.msra.mxu0 %v626_v5  ;;  %v814_v5 = vld [vmem:[#allocation7 + $0x7d0] sm:$0xff] }
  0xe4   : > { %981 = vmatpush.msra.mxu0 %v622_v8  ;;  %v607_v8 = vld [vmem:[#allocation7 + $0x158] sm:$0xff] }
  0xe5   : > { %v1512_v13 = vpop.eup %1511 }
  0xe6   : > { %v1894_v15 = vmul.f32 1.5925602, %v1512_v13  ;;  %982 = vmatpush.msra.mxu0 %v618_v11  ;;  %v730_v11 = vld [vmem:[#allocation7 + $0x530] sm:$0xff] }
  0xe7   : > { %v806_v13 = vld [vmem:[#allocation7 + $0x790] sm:$0xff] }
  0xe8   : > { %856 = vmatmul.f32.vlgmr.msra.gmra.mxu1 %v1894_v15  ;;  %983 = vmatpush.msra.mxu0 %v614_v14  ;;  %v679_v14 = vld [vmem:[#allocation7 + $0x398] sm:$0xff] }
  0xe9   : > { %1000 = vmatpush.msra.mxu1 %v690_v0  ;;  %916 = vmatmul.f32.vlgmr.msrb.gmra.mxu0 %v1891_v4  ;;  %v726_v0 = vld [vmem:[#allocation7 + $0x510] sm:$0xff] }
  0xea   : > { %984 = vmatpush.msra.mxu0 %v610_v1  ;;  %v599_v1 = vld [vmem:[#allocation7 + $0x118] sm:$0xff] }
  0xeb   : > { %1001 = vmatpush.msra.mxu1 %v686_v17  ;;  %v675_v17 = vld [vmem:[#allocation7 + $0x378] sm:$0xff] }
  0xec   : > { %985 = vmatpush.msra.mxu0 %v606_v19  ;;  %v798_v19 = vld [vmem:[#allocation7 + $0x750] sm:$0xff] }
  0xed   : > { %1002 = vmatpush.msra.mxu1 %v682_v20  ;;  %v595_v20 = vld [vmem:[#allocation7 + $0xf8] sm:$0xff] }
  0xee   : > { %986 = vmatpush.msra.mxu0 %v602_v21  ;;  %v671_v21 = vld [vmem:[#allocation7 + $0x358] sm:$0xff] }
  0xef   : > { %1003 = vmatpush.msra.mxu1 %v678_v22  ;;  %v718_v22 = vld [vmem:[#allocation7 + $0x4d0] sm:$0xff] }
  0xf0   : > { %987 = vmatpush.msra.mxu0 %v598_v23  ;;  %936 = vmatmul.f32.vlgmr.msrb.gmra.mxu1 %v1894_v15  ;;  %v794_v23 = vld [vmem:[#allocation7 + $0x730] sm:$0xff] }
  0xf1   : > { %1004 = vmatpush.msra.mxu1 %v674_v24  ;;  %v591_v24 = vld [vmem:[#allocation7 + $0xd8] sm:$0xff] }
  0xf2   : > { %988 = vmatpush.msra.mxu0 %v594_v25  ;;  %v667_v25 = vld [vmem:[#allocation7 + $0x338] sm:$0xff] }
  0xf3   : > { %1005 = vmatpush.msra.mxu1 %v670_v26  ;;  %v714_v26 = vld [vmem:[#allocation7 + $0x4b0] sm:$0xff] }
  0xf4   : > { %989 = vmatpush.msra.mxu0 %v590_v27  ;;  %v790_v27 = vld [vmem:[#allocation7 + $0x710] sm:$0xff] }
  0xf5   : > { %1006 = vmatpush.msra.mxu1 %v666_v28  ;;  %v587_v28 = vld [vmem:[#allocation7 + $0xb8] sm:$0xff] }
  0xf6   : > { %990 = vmatpush.msra.mxu0 %v586_v29  ;;  %v663_v29 = vld [vmem:[#allocation7 + $0x318] sm:$0xff] }
  0xf7   : > { %v493_v33 = vpop.f32.mrf.mxu0  ;;  %v513_v34 = vpop.f32.mrf.mxu1  ;;  %1007 = vmatpush.msra.mxu1 %v662_v30  ;;  %v710_v30 = vld [vmem:[#allocation7 + $0x490] sm:$0xff] }
  0xf8   : > { %v514_v36 = vadd.f32 %v513_v34, %v493_v33  ;;  %991 = vmatpush.msra.mxu0 %v582_v31  ;;  %v786_v31 = vld [vmem:[#allocation7 + $0x6f0] sm:$0xff]  ;;  %v659_v33 = vld [vmem:[#allocation7 + $0x2f8] sm:$0xff] }
  0xf9   : > { %1008 = vmatpush.msra.mxu1 %v658_v32  ;;  %v583_v32 = vld [vmem:[#allocation7 + $0x98] sm:$0xff]  ;;  %v706_v34 = vld [vmem:[#allocation7 + $0x470] sm:$0xff] }
  0xfa   : > { %1513 = vtanh.f32 %v514_v36  ;;  %992 = vmatpush.msra.mxu0 %v578_v35  ;;  %v782_v35 = vld [vmem:[#allocation7 + $0x6d0] sm:$0xff]  ;;  %v579_v36 = vld [vmem:[#allocation7 + $0x78] sm:$0xff] }
  0xfb   : > { %1009 = vmatpush.msra.mxu1 %v654_v37  ;;  %v655_v37 = vld [vmem:[#allocation7 + $0x2d8] sm:$0xff] }
  0xfc   : > { %993 = vmatpush.msra.mxu0 %v574_v38  ;;  %v702_v38 = vld [vmem:[#allocation7 + $0x450] sm:$0xff] }
  0xfd   : > { %1010 = vmatpush.msra.mxu1 %v650_v39  ;;  %v778_v39 = vld [vmem:[#allocation7 + $0x6b0] sm:$0xff] }
  0xfe   : > { %v533_v43 = vpop.f32.mrf.mxu2  ;;  %v553_v44 = vpop.f32.mrf.mxu3  ;;  %994 = vmatpush.msra.mxu0 %v570_v40  ;;  %v575_v40 = vld [vmem:[#allocation7 + $0x58] sm:$0xff] }
  0xff   : > { %v554_v46 = vadd.f32 %v553_v44, %v533_v43  ;;  %1011 = vmatpush.msra.mxu1 %v646_v41  ;;  %v651_v41 = vld [vmem:[#allocation7 + $0x2b8] sm:$0xff]  ;;  %v774_v43 = vld [vmem:[#allocation7 + $0x690] sm:$0xff] }
 0x100   : > { %v1514_v48 = vpop.eup %1513  ;;  %995 = vmatpush.msra.mxu0 %v566_v42  ;;  %v698_v42 = vld [vmem:[#allocation7 + $0x430] sm:$0xff]  ;;  %v571_v44 = vld [vmem:[#allocation7 + $0x38] sm:$0xff] }
 0x101   : > { %v1899_v50 = vmul.f32 1.5925602, %v1514_v48  ;;  %1515 = vtanh.f32 %v554_v46  ;;  %1012 = vmatpush.msra.mxu1 %v642_v45  ;;  %996 = vmatmul.f32.vlgmr.msra.gmra.mxu0 %v1891_v4  ;;  %v647_v45 = vld [vmem:[#allocation7 + $0x298] sm:$0xff]  ;;  %v694_v46 = vld [vmem:[#allocation7 + $0x410] sm:$0xff] }
 0x102   : > { %1060 = vmatpush.msrb.mxu0 %v627_v47  ;;  %v770_v47 = vld [vmem:[#allocation7 + $0x670] sm:$0xff]  ;;  %v567_v48 = vld [vmem:[#allocation7 + $0x18] sm:$0xff] }
 0x103   : > { %876 = vmatmul.f32.vlgmr.msra.gmra.mxu2 %v1899_v50  ;;  %1013 = vmatpush.msra.mxu1 %v638_v49  ;;  %v643_v49 = vld [vmem:[#allocation7 + $0x278] sm:$0xff] }
 0x104   : > { %1020 = vmatpush.msra.mxu2 %v754_v51  ;;  %1061 = vmatpush.msrb.mxu0 %v623_v52  ;;  %v755_v51 = vld [vmem:[#allocation7 + $0x5f8] sm:$0xff]  ;;  %v766_v52 = vld [vmem:[#allocation7 + $0x650] sm:$0xff] }
 0x105   : > { %1014 = vmatpush.msra.mxu1 %v634_v53  ;;  %v639_v53 = vld [vmem:[#allocation7 + $0x258] sm:$0xff] }
 0x106   : > { %1021 = vmatpush.msra.mxu2 %v750_v54  ;;  %1062 = vmatpush.msrb.mxu0 %v619_v55  ;;  %v751_v54 = vld [vmem:[#allocation7 + $0x5d8] sm:$0xff]  ;;  %v762_v55 = vld [vmem:[#allocation7 + $0x630] sm:$0xff] }
 0x107   : > { %v1516_v60 = vpop.eup %1515  ;;  %1015 = vmatpush.msra.mxu1 %v630_v56  ;;  %v635_v56 = vld [vmem:[#allocation7 + $0x238] sm:$0xff] }
 0x108   : > { %v1903_v62 = vmul.f32 1.5925602, %v1516_v60  ;;  %1022 = vmatpush.msra.mxu2 %v746_v57  ;;  %1016 = vmatmul.f32.vlgmr.msra.gmra.mxu1 %v1894_v15  ;;  %v747_v57 = vld [vmem:[#allocation7 + $0x5b8] sm:$0xff] }
 0x109   : > { %1063 = vmatpush.msrb.mxu0 %v615_v58  ;;  %1080 = vmatpush.msrb.mxu1 %v691_v59  ;;  %v758_v58 = vld [vmem:[#allocation7 + $0x610] sm:$0xff]  ;;  %v631_v59 = vld [vmem:[#allocation7 + $0x218] sm:$0xff] }
 0x10a   : > { %896 = vmatmul.f32.vlgmr.msra.gmra.mxu3 %v1903_v62  ;;  %1023 = vmatpush.msra.mxu2 %v742_v61  ;;  %v743_v60 = vld [vmem:[#allocation7 + $0x598] sm:$0xff] }
 0x10b   : > { %1040 = vmatpush.msra.mxu3 %v818_v63  ;;  %956 = vmatmul.f32.vlgmr.msrb.gmra.mxu2 %v1899_v50  ;;  %v819_v61 = vld [vmem:[#allocation7 + $0x7f8] sm:$0xff] }
 0x10c   : > { %1024 = vmatpush.msra.mxu2 %v738_v2  ;;  %1064 = vmatpush.msrb.mxu0 %v611_v3  ;;  %v815_v63 = vld [vmem:[#allocation7 + $0x7d8] sm:$0xff] }
 0x10d   : > { %1041 = vmatpush.msra.mxu3 %v814_v5  ;;  %1081 = vmatpush.msrb.mxu1 %v687_v6  ;;  %v735_v2 = vld [vmem:[#allocation7 + $0x558] sm:$0xff] }
 0x10e   : > { %1025 = vmatpush.msra.mxu2 %v734_v7  ;;  %1065 = vmatpush.msrb.mxu0 %v607_v8  ;;  %v811_v3 = vld [vmem:[#allocation7 + $0x7b8] sm:$0xff] }
 0x10f   : > { %1042 = vmatpush.msra.mxu3 %v810_v9  ;;  %1082 = vmatpush.msrb.mxu1 %v683_v10  ;;  %v731_v5 = vld [vmem:[#allocation7 + $0x538] sm:$0xff] }
 0x110   : > { %1026 = vmatpush.msra.mxu2 %v730_v11  ;;  %1066 = vmatpush.msrb.mxu0 %v603_v12  ;;  %v807_v6 = vld [vmem:[#allocation7 + $0x798] sm:$0xff] }
 0x111   : > { %1043 = vmatpush.msra.mxu3 %v806_v13  ;;  %1083 = vmatpush.msrb.mxu1 %v679_v14  ;;  %v727_v7 = vld [vmem:[#allocation7 + $0x518] sm:$0xff] }
 0x112   : > { %976 = vmatmul.f32.vlgmr.msrb.gmra.mxu3 %v1903_v62  ;;  %1027 = vmatpush.msra.mxu2 %v726_v0  ;;  %v803_v8 = vld [vmem:[#allocation7 + $0x778] sm:$0xff] }
 0x113   : > { %1044 = vmatpush.msra.mxu3 %v802_v16  ;;  %1067 = vmatpush.msrb.mxu0 %v599_v1  ;;  %v723_v9 = vld [vmem:[#allocation7 + $0x4f8] sm:$0xff] }
 0x114   : > { %1084 = vmatpush.msrb.mxu1 %v675_v17  ;;  %1028 = vmatpush.msra.mxu2 %v722_v18  ;;  %v799_v10 = vld [vmem:[#allocation7 + $0x758] sm:$0xff] }
 0x115   : > { %1045 = vmatpush.msra.mxu3 %v798_v19  ;;  %1068 = vmatpush.msrb.mxu0 %v595_v20  ;;  %v795_v11 = vld [vmem:[#allocation7 + $0x738] sm:$0xff] }
 0x116   : > { %1085 = vmatpush.msrb.mxu1 %v671_v21  ;;  %1029 = vmatpush.msra.mxu2 %v718_v22  ;;  %v715_v12 = vld [vmem:[#allocation7 + $0x4b8] sm:$0xff] }
 0x117   : > { %1046 = vmatpush.msra.mxu3 %v794_v23  ;;  %1069 = vmatpush.msrb.mxu0 %v591_v24  ;;  %v791_v13 = vld [vmem:[#allocation7 + $0x718] sm:$0xff] }
 0x118   : > { %1086 = vmatpush.msrb.mxu1 %v667_v25  ;;  %1030 = vmatpush.msra.mxu2 %v714_v26  ;;  %v711_v14 = vld [vmem:[#allocation7 + $0x498] sm:$0xff]  ;;  %v1162_v26 = vld [vmem:[#allocation8 + $0x70] sm:$0xff] }
 0x119   : > { %1047 = vmatpush.msra.mxu3 %v790_v27  ;;  %1070 = vmatpush.msrb.mxu0 %v587_v28  ;;  %v787_v0 = vld [vmem:[#allocation7 + $0x6f8] sm:$0xff]  ;;  %v1161_v28 = vld [vmem:[#allocation8 + $0x68] sm:$0xff] }
 0x11a   : > { %1087 = vmatpush.msrb.mxu1 %v663_v29  ;;  %1031 = vmatpush.msra.mxu2 %v710_v30  ;;  %v707_v16 = vld [vmem:[#allocation7 + $0x478] sm:$0xff]  ;;  %v1160_v29 = vld [vmem:[#allocation8 + $0x60] sm:$0xff] }
 0x11b   : > { %1048 = vmatpush.msra.mxu3 %v786_v31  ;;  %1071 = vmatpush.msrb.mxu0 %v583_v32  ;;  %v783_v1 = vld [vmem:[#allocation7 + $0x6d8] sm:$0xff]  ;;  %v1158_v32 = vld [vmem:[#allocation8 + $0x50] sm:$0xff] }
 0x11c   : > { %1088 = vmatpush.msrb.mxu1 %v659_v33  ;;  %1032 = vmatpush.msra.mxu2 %v706_v34  ;;  %v703_v17 = vld [vmem:[#allocation7 + $0x458] sm:$0xff]  ;;  %v1157_v33 = vld [vmem:[#allocation8 + $0x48] sm:$0xff] }
 0x11d   : > { %1049 = vmatpush.msra.mxu3 %v782_v35  ;;  %1072 = vmatpush.msrb.mxu0 %v579_v36  ;;  %v779_v18 = vld [vmem:[#allocation7 + $0x6b8] sm:$0xff]  ;;  %v1177_v34 = vld [vmem:[#allocation8 + $0xe8] sm:$0xff]  ;;  %v1156_v35 = vld [vmem:[#allocation8 + $0x40] sm:$0xff] }
 0x11e   : > { %1089 = vmatpush.msrb.mxu1 %v655_v37  ;;  %1033 = vmatpush.msra.mxu2 %v702_v38  ;;  %v699_v19 = vld [vmem:[#allocation7 + $0x438] sm:$0xff]  ;;  %v1176_v36 = vld [vmem:[#allocation8 + $0xe0] sm:$0xff]  ;;  %v1154_v38 = vld [vmem:[#allocation8 + $0x30] sm:$0xff] }
 0x11f   : > { %1050 = vmatpush.msra.mxu3 %v778_v39  ;;  %1073 = vmatpush.msrb.mxu0 %v575_v40  ;;  %v775_v20 = vld [vmem:[#allocation7 + $0x698] sm:$0xff]  ;;  %v1174_v39 = vld [vmem:[#allocation8 + $0xd0] sm:$0xff]  ;;  %v1153_v40 = vld [vmem:[#allocation8 + $0x28] sm:$0xff] }
 0x120   : > { %1090 = vmatpush.msrb.mxu1 %v651_v41  ;;  %1034 = vmatpush.msra.mxu2 %v698_v42  ;;  %v695_v21 = vld [vmem:[#allocation7 + $0x418] sm:$0xff]  ;;  %v1173_v41 = vld [vmem:[#allocation8 + $0xc8] sm:$0xff]  ;;  %v1152_v42 = vld [vmem:[#allocation8 + $0x20] sm:$0xff] }
 0x121   : > { %1051 = vmatpush.msra.mxu3 %v774_v43  ;;  %1074 = vmatpush.msrb.mxu0 %v571_v44  ;;  %v771_v22 = vld [vmem:[#allocation7 + $0x678] sm:$0xff]  ;;  %v1172_v43 = vld [vmem:[#allocation8 + $0xc0] sm:$0xff] }
 0x122   : > { %1091 = vmatpush.msrb.mxu1 %v647_v45  ;;  %1035 = vmatpush.msra.mxu2 %v694_v46  ;;  %v767_v23 = vld [vmem:[#allocation7 + $0x658] sm:$0xff]  ;;  %v1150_v46 = vld [vmem:[#allocation8 + $0x10] sm:$0xff] }
 0x123   : > { %1052 = vmatpush.msra.mxu3 %v770_v47  ;;  %1075 = vmatpush.msrb.mxu0 %v567_v48  ;;  %v763_v24 = vld [vmem:[#allocation7 + $0x638] sm:$0xff]  ;;  %v1170_v47 = vld [vmem:[#allocation8 + $0xb0] sm:$0xff]  ;;  %v1149_v48 = vld [vmem:[#allocation8 + $0x8] sm:$0xff] }
 0x124   : > { %1092 = vmatpush.msrb.mxu1 %v643_v49  ;;  %1036 = vmatmul.f32.vlgmr.msra.gmra.mxu2 %v1899_v50  ;;  %v1163_v25 = vld [vmem:[#allocation8 + $0x78] sm:$0xff]  ;;  %v1169_v49 = vld [vmem:[#allocation8 + $0xa8] sm:$0xff] }
 0x125   : > { %1076 = vmatmul.f32.vlgmr.msrb.gmra.mxu0 %v1891_v4  ;;  %1100 = vmatpush.msrb.mxu2 %v755_v51  ;;  %v739_v4 = vld [vmem:[#allocation7 + $0x578] sm:$0xff]  ;;  %v1148_v51 = vld [vmem:[#allocation8] sm:$0xff] }
 0x126   : > { %1053 = vmatpush.msra.mxu3 %v766_v52  ;;  %1093 = vmatpush.msrb.mxu1 %v639_v53  ;;  %v759_v27 = vld [vmem:[#allocation7 + $0x618] sm:$0xff]  ;;  %v1168_v52 = vld [vmem:[#allocation8 + $0xa0] sm:$0xff] }
 0x127   : > { %1101 = vmatpush.msrb.mxu2 %v751_v54  ;;  %1212 = vmatpush.msra.mxu0 %v1163_v25  ;;  %v1159_v30 = vld [vmem:[#allocation8 + $0x58] sm:$0xff]  ;;  %v1180_v25 = vld [vmem:[#allocation8 + $0x100] sm:$0xff] }
 0x128   : > { %1054 = vmatpush.msra.mxu3 %v762_v55  ;;  %1094 = vmatpush.msrb.mxu1 %v635_v56  ;;  %v1179_v31 = vld [vmem:[#allocation8 + $0xf8] sm:$0xff]  ;;  %v1194_v55 = vld [vmem:[#allocation8 + $0x170] sm:$0xff] }
 0x129   : > { %1102 = vmatpush.msrb.mxu2 %v747_v57  ;;  %1213 = vmatpush.msra.mxu0 %v1162_v26  ;;  %v1155_v37 = vld [vmem:[#allocation8 + $0x38] sm:$0xff]  ;;  %v1166_v56 = vld [vmem:[#allocation8 + $0x90] sm:$0xff]  ;;  %v1193_v57 = vld [vmem:[#allocation8 + $0x168] sm:$0xff] }
 0x12a   : > { %1055 = vmatpush.msra.mxu3 %v758_v58  ;;  %1095 = vmatpush.msrb.mxu1 %v631_v59  ;;  %v1151_v44 = vld [vmem:[#allocation8 + $0x18] sm:$0xff]  ;;  %v1165_v58 = vld [vmem:[#allocation8 + $0x88] sm:$0xff]  ;;  %v1192_v59 = vld [vmem:[#allocation8 + $0x160] sm:$0xff] }
 0x12b   : > { %1056 = vmatmul.f32.vlgmr.msra.gmra.mxu3 %v1903_v62  ;;  %1096 = vmatmul.f32.vlgmr.msrb.gmra.mxu1 %v1894_v15  ;;  %v719_v15 = vld [vmem:[#allocation7 + $0x4d8] sm:$0xff] }
 0x12c   : > { %1103 = vmatpush.msrb.mxu2 %v743_v60  ;;  %1120 = vmatpush.msrb.mxu3 %v819_v61  ;;  %v1171_v45 = vld [vmem:[#allocation8 + $0xb8] sm:$0xff]  ;;  %v1164_v60 = vld [vmem:[#allocation8 + $0x80] sm:$0xff] }
 0x12d   : > { %1214 = vmatpush.msra.mxu0 %v1161_v28  ;;  %1232 = vmatpush.msra.mxu1 %v1179_v31  ;;  %v1195_v53 = vld [vmem:[#allocation8 + $0x178] sm:$0xff]  ;;  %v1209_v28 = vld [vmem:[#allocation8 + $0x1e8] sm:$0xff] }
 0x12e   : > { %1104 = vmatpush.msrb.mxu2 %v739_v4  ;;  %1121 = vmatpush.msrb.mxu3 %v815_v63  ;;  %v1167_v54 = vld [vmem:[#allocation8 + $0x98] sm:$0xff]  ;;  %v1190_v4 = vld [vmem:[#allocation8 + $0x150] sm:$0xff] }
 0x12f   : > { %1215 = vmatpush.msra.mxu0 %v1160_v29  ;;  %v1191_v61 = vld [vmem:[#allocation8 + $0x158] sm:$0xff] }
 0x130   : > { %1105 = vmatpush.msrb.mxu2 %v735_v2  ;;  %1122 = vmatpush.msrb.mxu3 %v811_v3  ;;  %v1189_v2 = vld [vmem:[#allocation8 + $0x148] sm:$0xff]  ;;  %v1211_v26 = vld [vmem:[#allocation8 + $0x1f8] sm:$0xff] }
 0x131   : > { %1216 = vmatpush.msra.mxu0 %v1159_v30  ;;  %v1208_v30 = vld [vmem:[#allocation8 + $0x1e0] sm:$0xff] }
 0x132   : > { %1106 = vmatpush.msrb.mxu2 %v731_v5  ;;  %1123 = vmatpush.msrb.mxu3 %v807_v6  ;;  %v1188_v6 = vld [vmem:[#allocation8 + $0x140] sm:$0xff] }
 0x133   : > { %1217 = vmatpush.msra.mxu0 %v1158_v32  ;;  %v1207_v32 = vld [vmem:[#allocation8 + $0x1d8] sm:$0xff] }
 0x134   : > { %1107 = vmatpush.msrb.mxu2 %v727_v7  ;;  %1124 = vmatpush.msrb.mxu3 %v803_v8  ;;  %v1187_v7 = vld [vmem:[#allocation8 + $0x138] sm:$0xff] }
 0x135   : > { %1218 = vmatpush.msra.mxu0 %v1157_v33  ;;  %v1205_v33 = vld [vmem:[#allocation8 + $0x1c8] sm:$0xff] }
 0x136   : > { %1108 = vmatpush.msrb.mxu2 %v723_v9  ;;  %1125 = vmatpush.msrb.mxu3 %v799_v10  ;;  %v1186_v9 = vld [vmem:[#allocation8 + $0x130] sm:$0xff] }
 0x137   : > { %1219 = vmatpush.msra.mxu0 %v1156_v35  ;;  %v1204_v35 = vld [vmem:[#allocation8 + $0x1c0] sm:$0xff] }
 0x138   : > { %1109 = vmatpush.msrb.mxu2 %v719_v15  ;;  %1126 = vmatpush.msrb.mxu3 %v795_v11 }
 0x139   : > { %1220 = vmatpush.msra.mxu0 %v1155_v37 }
 0x13a   : > { %1110 = vmatpush.msrb.mxu2 %v715_v12  ;;  %1127 = vmatpush.msrb.mxu3 %v791_v13  ;;  %v1185_v13 = vld [vmem:[#allocation8 + $0x128] sm:$0xff] }
 0x13b   : > { %1221 = vmatpush.msra.mxu0 %v1154_v38  ;;  %v1202_v38 = vld [vmem:[#allocation8 + $0x1b0] sm:$0xff] }
 0x13c   : > { %1111 = vmatpush.msrb.mxu2 %v711_v14  ;;  %1128 = vmatpush.msrb.mxu3 %v787_v0 }
 0x13d   : > { %1222 = vmatpush.msra.mxu0 %v1153_v40 }
 0x13e   : > { %1112 = vmatpush.msrb.mxu2 %v707_v16  ;;  %1129 = vmatpush.msrb.mxu3 %v783_v1  ;;  %v1184_v16 = vld [vmem:[#allocation8 + $0x120] sm:$0xff] }
 0x13f   : > { %1223 = vmatpush.msra.mxu0 %v1152_v42  ;;  %v1201_v42 = vld [vmem:[#allocation8 + $0x1a8] sm:$0xff] }
 0x140   : > { %1113 = vmatpush.msrb.mxu2 %v703_v17  ;;  %1130 = vmatpush.msrb.mxu3 %v779_v18  ;;  %v1183_v17 = vld [vmem:[#allocation8 + $0x118] sm:$0xff] }
 0x141   : > { %1224 = vmatpush.msra.mxu0 %v1151_v44  ;;  %v1200_v44 = vld [vmem:[#allocation8 + $0x1a0] sm:$0xff] }
 0x142   : > { %1114 = vmatpush.msrb.mxu2 %v699_v19  ;;  %1131 = vmatpush.msrb.mxu3 %v775_v20  ;;  %v1182_v20 = vld [vmem:[#allocation8 + $0x110] sm:$0xff] }
 0x143   : > { %1225 = vmatpush.msra.mxu0 %v1150_v46  ;;  %v1198_v46 = vld [vmem:[#allocation8 + $0x190] sm:$0xff] }
 0x144   : > { %1115 = vmatpush.msrb.mxu2 %v695_v21  ;;  %1132 = vmatpush.msrb.mxu3 %v771_v22 }
 0x145   : > { %1116 = vmatmul.f32.vlgmr.msrb.gmra.mxu2 %v1899_v50  ;;  %v1178_v50 = vld [vmem:[#allocation8 + $0xf0] sm:$0xff]  ;;  %1226 = vmatpush.msra.mxu0 %v1149_v48 }
 0x146   : > { %1133 = vmatpush.msrb.mxu3 %v767_v23  ;;  %1233 = vmatpush.msra.mxu1 %v1178_v50  ;;  %v1206_v50 = vld [vmem:[#allocation8 + $0x1d0] sm:$0xff] }
 0x147   : > { %1227 = vmatpush.msra.mxu0 %v1148_v51  ;;  %1252 = vmatpush.msra.mxu2 %v1195_v53  ;;  %v1196_v51 = vld [vmem:[#allocation8 + $0x180] sm:$0xff] }
 0x148   : > { %1134 = vmatpush.msrb.mxu3 %v763_v24  ;;  %1234 = vmatpush.msra.mxu1 %v1177_v34  ;;  %v1181_v24 = vld [vmem:[#allocation8 + $0x108] sm:$0xff] }
 0x149   : > { %1253 = vmatpush.msra.mxu2 %v1194_v55 }
 0x14a   : > { %1135 = vmatpush.msrb.mxu3 %v759_v27  ;;  %1235 = vmatpush.msra.mxu1 %v1176_v36  ;;  %v1210_v27 = vld [vmem:[#allocation8 + $0x1f0] sm:$0xff]  ;;  %v1203_v36 = vld [vmem:[#allocation8 + $0x1b8] sm:$0xff] }
 0x14b   : > { %1136 = vmatmul.f32.vlgmr.msrb.gmra.mxu3 %v1903_v62  ;;  %v1175_v62 = vld [vmem:[#allocation8 + $0xd8] sm:$0xff]  ;;  %1254 = vmatpush.msra.mxu2 %v1193_v57 }
 0x14c   : > { %1236 = vmatpush.msra.mxu1 %v1175_v62  ;;  %1272 = vmatpush.msra.mxu3 %v1211_v26 }
 0x14d   : > { %1255 = vmatpush.msra.mxu2 %v1192_v59 }
 0x14e   : > { %1237 = vmatpush.msra.mxu1 %v1174_v39  ;;  %1273 = vmatpush.msra.mxu3 %v1210_v27 }
 0x14f   : > { %1256 = vmatpush.msra.mxu2 %v1191_v61 }
 0x150   : > { %1238 = vmatpush.msra.mxu1 %v1173_v41  ;;  %1274 = vmatpush.msra.mxu3 %v1209_v28 }
 0x151   : > { %1257 = vmatpush.msra.mxu2 %v1190_v4 }
 0x152   : > { %1239 = vmatpush.msra.mxu1 %v1172_v43  ;;  %1275 = vmatpush.msra.mxu3 %v1208_v30 }
 0x153   : > { %1258 = vmatpush.msra.mxu2 %v1189_v2 }
 0x154   : > { %1240 = vmatpush.msra.mxu1 %v1171_v45  ;;  %1276 = vmatpush.msra.mxu3 %v1207_v32  ;;  %v1199_v45 = vld [vmem:[#allocation8 + $0x198] sm:$0xff] }
 0x155   : > { %1259 = vmatpush.msra.mxu2 %v1188_v6 }
 0x156   : > { %1241 = vmatpush.msra.mxu1 %v1170_v47  ;;  %1277 = vmatpush.msra.mxu3 %v1206_v50  ;;  %v1197_v47 = vld [vmem:[#allocation8 + $0x188] sm:$0xff] }
 0x157   : > { %1260 = vmatpush.msra.mxu2 %v1187_v7 }
 0x158   : > { %1242 = vmatpush.msra.mxu1 %v1169_v49  ;;  %1278 = vmatpush.msra.mxu3 %v1205_v33 }
 0x159   : > { %1261 = vmatpush.msra.mxu2 %v1186_v9 }
 0x15a   : > { %1243 = vmatpush.msra.mxu1 %v1168_v52  ;;  %1279 = vmatpush.msra.mxu3 %v1204_v35 }
 0x15b   : > { %1262 = vmatpush.msra.mxu2 %v1185_v13 }
 0x15c   : > { %1244 = vmatpush.msra.mxu1 %v1167_v54  ;;  %1280 = vmatpush.msra.mxu3 %v1203_v36 }
 0x15d   : > { %1263 = vmatpush.msra.mxu2 %v1184_v16 }
 0x15e   : > { %1245 = vmatpush.msra.mxu1 %v1166_v56  ;;  %v837_v3 = vpop.f32.mrf.mxu0  ;;  %1281 = vmatpush.msra.mxu3 %v1202_v38 }
 0x15f   : > { %1264 = vmatpush.msra.mxu2 %v1183_v17 }
 0x160   : > { %1246 = vmatpush.msra.mxu1 %v1165_v58  ;;  %1282 = vmatpush.msra.mxu3 %v1201_v42 }
 0x161   : > { %1265 = vmatpush.msra.mxu2 %v1182_v20 }
 0x162   : > { %1247 = vmatpush.msra.mxu1 %v1164_v60  ;;  %1283 = vmatpush.msra.mxu3 %v1200_v44 }
 0x163   : > { %1266 = vmatpush.msra.mxu2 %v1181_v24 }
 0x164   : > { %1284 = vmatpush.msra.mxu3 %v1199_v45 }
 0x165   : > { %v857_v63 = vpop.f32.mrf.mxu1  ;;  %1267 = vmatpush.msra.mxu2 %v1180_v25 }
 0x166   : > { %v858_v8 = vadd.f32 %v857_v63, %v837_v3  ;;  %v917_v14 = vpop.f32.mrf.mxu0  ;;  %1285 = vmatpush.msra.mxu3 %v1198_v46 }
 0x168   : > { %1286 = vmatpush.msra.mxu3 %v1197_v47 }
 0x16a   : > { %1287 = vmatpush.msra.mxu3 %v1196_v51 }
 0x16d   : > { %v937_v12 = vpop.f32.mrf.mxu1 }
 0x16e   : > { %v938_v1 = vadd.f32 %v937_v12, %v917_v14 }
 0x17e   : > { %v997_v37 = vpop.f32.mrf.mxu0 }
 0x185   : > { %v1017_v34 = vpop.f32.mrf.mxu1 }
 0x186   : > { %v877_v5 = vpop.f32.mrf.mxu2  ;;  %v1018_v39 = vadd.f32 %v1017_v34, %v997_v37 }
 0x187   : > { %v878_v10 = vadd.f32 %v877_v5, %v858_v8 }
 0x18d   : > { %v897_v15 = vpop.f32.mrf.mxu3 }
 0x18e   : > { %v898_v11 = vadd.f32 %v897_v15, %v878_v10  ;;  %v957_v0 = vpop.f32.mrf.mxu2 }
 0x18f   : > { %v958_v18 = vadd.f32 %v957_v0, %v938_v1 }
 0x190   : > { %1517 = vtanh.f32 %v898_v11 }
 0x195   : > { %v977_v19 = vpop.f32.mrf.mxu3 }
 0x196   : > { %v1518_v21 = vpop.eup %1517  ;;  %v978_v22 = vadd.f32 %v977_v19, %v958_v18 }
 0x197   : > { %v1144_v23 = vmul.f32 1.5925602, %v1518_v21 }
 0x198   : > { %1519 = vtanh.f32 %v978_v22 }
 0x199   : > { %1228 = vmatmul.f32.vlgmr.msra.gmra.mxu0 %v1144_v23 }
 0x19e   : > { %v1520_v29 = vpop.eup %1519 }
 0x19f   : > { %v1145_v31 = vmul.f32 1.5925602, %v1520_v29 }
 0x1a1   : > { %1248 = vmatmul.f32.vlgmr.msra.gmra.mxu1 %v1145_v31 }
 0x1a2   : > { %v1077_v53 = vpop.f32.mrf.mxu0 }
 0x1a7   : > { %v1037_v62 = vpop.f32.mrf.mxu2 }
 0x1a8   : > { %v1038_v40 = vadd.f32 %v1037_v62, %v1018_v39  ;;  %v1097_v52 = vpop.f32.mrf.mxu1 }
 0x1a9   : > { %v1098_v55 = vadd.f32 %v1097_v52, %v1077_v53 }
 0x1ae   : > { %v1057_v41 = vpop.f32.mrf.mxu3 }
 0x1af   : > { %v1058_v43 = vadd.f32 %v1057_v41, %v1038_v40 }
 0x1b1   : > { %1521 = vtanh.f32 %v1058_v43 }
 0x1b7   : > { %v1522_v48 = vpop.eup %1521 }
 0x1b8   : > { %v1146_v49 = vmul.f32 1.5925602, %v1522_v48 }
 0x1ba   : > { %1268 = vmatmul.f32.vlgmr.msra.gmra.mxu2 %v1146_v49 }
 0x1c8   : > { %v1117_v54 = vpop.f32.mrf.mxu2 }
 0x1c9   : > { %v1118_v56 = vadd.f32 %v1117_v54, %v1098_v55 }
 0x1ce   : > { %v1137_v57 = vpop.f32.mrf.mxu3 }
 0x1cf   : > { %v1138_v58 = vadd.f32 %v1137_v57, %v1118_v56 }
 0x1d1   : > { %1523 = vtanh.f32 %v1138_v58 }
 0x1d7   : > { %v1524_v59 = vpop.eup %1523 }
 0x1d8   : > { %v1147_v60 = vmul.f32 1.5925602, %v1524_v59 }
 0x1da   : > { %1288 = vmatmul.f32.vlgmr.msra.gmra.mxu3 %v1147_v60 }
 0x216   : > { %v1229_v4 = vpop.f32.mrf.mxu0 }
 0x21e   : > { %v1249_v61 = vpop.f32.mrf.mxu1 }
 0x21f   : > { %v1250_v2 = vadd.f32 %v1249_v61, %v1229_v4 }
 0x23d   : > { %v1269_v63 = vpop.f32.mrf.mxu2 }
 0x23e   : > { %v1270_v3 = vadd.f32 %v1269_v63, %v1250_v2 }
 0x25d   : > { %v1289_v5 = vpop.f32.mrf.mxu3 }
 0x25e   : > { %v1290_v6 = vadd.f32 %v1289_v5, %v1270_v3 }
 0x260   : > { %1292 = vst [vmem:[%s265_s13] sm:$0xff] %v1290_v6 }
 0x261   : > { %1672 = shalt.err (!%p1669_p8)
}
 0x262   : > { %1442 = dma.vmem_to_hbm [thread:$0]  (%p1828_p12), %s1307_s14, 128, %s1309_s19, %s1294_s21  }
 0x263 PF: > { %p1469_p9 = scmp.ge.s32.totalorder %s1719_s18, 2  ;;  %s1320_s28 = sand.u32 1, %s1707_s15  }
 0x264   : > { %s1321_s10 = scalar_lea.sflag [#allocation4], %s1320_s28 }
 0x265   : > { %p1459_p10 = pnand %p1469_p9, %p1833_p2 }
 0x267   : > { %p1460_p13 = pneg %p1459_p10 }
 0x269   : > { %1702 = dma.done.wait (%p1460_p13), %s1321_s10, 128  }
 0x26a   : > { %1704 = vsyncadd (%p1460_p13), %s1321_s10, 4294967168  ;;  %p19_p0 = scmp.ge.s32.totalorder %s1808_s20, 5   ;;  %s1959_s15 = smov %s1711_s16 }
 0x26b   : > { %s1960_s16 = smov %s1715_s17  ;;  %s1961_s17 = smov %s1820_s25 }
 0x26c   : > { %s1962_s18 = smov %s1808_s20  ;;  %21 = sbr.rel (!%p19_p0) target bundleno = 7 (0x7), region = 93 }
 0x271   :  { %1327 = vsyncpa [#allocation3], 1 }
 0x272   :  { %1329 = vsyncpa [#allocation3 + $0x1], 1 }
 0x273   :  { %1330 = vsyncpa [#allocation6], 1 }
 0x274   :  { %1331 = vsyncpa [#allocation9], 1 }
 0x275   :  { %1332 = vsyncpa [#allocation4], 1 }
 0x276   :  { %1334 = vsyncpa [#allocation4 + $0x1], 1 }

</bundles_post_ra>
